<compile_context>
chip_gen: v7x
topology: tpu7x:2x2x1
jax: 0.10.0
libtpu: 0.0.40
codegen_flags: <defaults>
</compile_context>

<pallas_src>
import math

import numpy as np

import jax
import jax.numpy as jnp
from jax.experimental import pallas as pl
from jax.experimental.pallas import tpu as pltpu

_BN_EPS = 1e-5
_K = 5          # conv kernel size
_CLS_PAD = 128  # lane-padded width of the 10-way classifier output


def _lane_group_sum(v, groups, size):
    """Sum `groups` consecutive lane-groups of width `size` -> [..., size]."""
    out = v[:, :size]
    for g in range(1, groups):
        out = out + v[:, g * size:(g + 1) * size]
    return out


# ------------------------------ fused kernel -------------------------------

def _fused_net_kernel(
    # inputs
    xcat_ref,            # [2, B*PH, K*W]       bf16  row-phase im2col of the image
    w1rhs_ref,           # [2, K*W, PW*C1]      bf16  conv1 Toeplitz rhs (per col phase)
    g1_ref, b1_ref,      # (1, C1)              f32   BatchNorm2d(32) gamma / beta
    rhs2_ref,            # [K*PW*C1, HO2*C2]    bf16  conv2 weights, banded over tj
    g2_ref, b2_ref,      # (1, C2)              f32   BatchNorm2d(64) gamma / beta
    wcat_ref,            # [F, 256+1024]        bf16  [cls1_w | fc1@fc2@fc3]
    cg_ref, cb_ref,      # (1, 256)             f32   BatchNorm1d(256) gamma / beta
    cls2w_ref,           # [256, 128]           bf16  (zero-padded from 10 cols)
    cls2b_ref,           # (1, 128)             f32   (zero-padded)
    fcb_ref,             # (1, 1024)            f32   folded fc bias
    # outputs
    fc_out_ref,          # [B, 1024] f32
    cls_out_ref,         # [B, 128]  f32
):
    f32 = jnp.float32
    bf16 = jnp.bfloat16

    B = fc_out_ref.shape[0]
    BPH = xcat_ref.shape[1]
    PH = BPH // B
    C1 = g1_ref.shape[1]
    PWC1 = w1rhs_ref.shape[2]
    PW = PWC1 // C1
    C2 = g2_ref.shape[1]
    HO2 = rhs2_ref.shape[1] // C2        # conv2 output height == width (2)
    NCLS = cg_ref.shape[1]               # 256

    # ----- conv1 (+MaxPool phases) as 4 MXU matmuls; rows = (b, pooled row) -----
    accs = []
    for pi in range(2):
        lhs = xcat_ref[pi]                               # [B*PH, K*W] bf16
        for pj in range(2):
            accs.append(jnp.dot(lhs, w1rhs_ref[pj],
                                preferred_element_type=f32))   # [B*PH, PW*C1]

    # train-mode BN stats over B * Ho1 * Wo1 samples per channel (two-pass, f32)
    n1 = float(len(accs) * BPH * PW)
    ssum = None
    for a in accs:
        r = jnp.sum(a, axis=0, keepdims=True)            # [1, PW*C1]
        ssum = r if ssum is None else ssum + r
    m1 = _lane_group_sum(ssum, PW, C1) / n1               # [1, C1]
    m1t = jnp.concatenate([m1] * PW, axis=-1)             # [1, PW*C1]
    vsum = None
    for a in accs:
        d = a - m1t
        r = jnp.sum(d * d, axis=0, keepdims=True)
        vsum = r if vsum is None else vsum + r
    v1 = _lane_group_sum(vsum, PW, C1) / n1
    scale1 = jax.lax.rsqrt(v1 + _BN_EPS) * g1_ref[...]
    shift1 = b1_ref[...] - m1 * scale1
    scale1t = jnp.concatenate([scale1] * PW, axis=-1)
    shift1t = jnp.concatenate([shift1] * PW, axis=-1)

    # BN + SiLU per phase, MaxPool2d(2) == elementwise max of the 4 phases
    hp = None
    for a in accs:
        z = a * scale1t + shift1t
        z = z * jax.nn.sigmoid(z)
        hp = z if hp is None else jnp.maximum(hp, z)      # [B*PH, PW*C1]

    # ----- conv2 as ONE im2col matmul: [B*HO2, K*PW*C1] @ [K*PW*C1, HO2*C2] -----
    cols = []
    for kh in range(_K):
        parts = [hp[b * PH + kh: b * PH + kh + HO2, :] for b in range(B)]
        cols.append(jnp.concatenate(parts, axis=0))       # [B*HO2, PW*C1], rows=(b,ti)
    im2col = jnp.concatenate(cols, axis=-1).astype(bf16)  # [B*HO2, K*PW*C1]
    out2 = jnp.dot(im2col, rhs2_ref[...],
                   preferred_element_type=f32)            # [B*HO2, HO2*C2], lanes=(tj,c2)

    # BN2 (batch stats over B*HO2*HO2 samples per channel, two-pass) + SiLU
    n2 = float(B * HO2 * HO2)
    s2 = jnp.sum(out2, axis=0, keepdims=True)
    m2 = _lane_group_sum(s2, HO2, C2) / n2                 # [1, C2]
    m2t = jnp.concatenate([m2] * HO2, axis=-1)
    d2 = out2 - m2t
    v2 = _lane_group_sum(jnp.sum(d2 * d2, axis=0, keepdims=True), HO2, C2) / n2
    scale2 = jax.lax.rsqrt(v2 + _BN_EPS) * g2_ref[...]
    shift2 = b2_ref[...] - m2 * scale2
    z2 = (out2 * jnp.concatenate([scale2] * HO2, axis=-1)
          + jnp.concatenate([shift2] * HO2, axis=-1))
    a2 = z2 * jax.nn.sigmoid(z2)                           # [B*HO2, HO2*C2]

    # flatten to [B, F] in (ti, tj, c2) order (equivalent reparameterization of
    # PyTorch's (C,H,W) flatten since the Lazy head weights are init'd in-script)
    rows = []
    for b in range(B):
        rows.append(jnp.concatenate(
            [a2[b * HO2 + t: b * HO2 + t + 1, :] for t in range(HO2)], axis=-1))
    flat = jnp.concatenate(rows, axis=0).astype(bf16)      # [B, F]

    # ----- heads: one shared matmul [B, F] @ [F, 256+1024] -----
    heads = jnp.dot(flat, wcat_ref[...], preferred_element_type=f32)
    c1v = heads[:, :NCLS]                                  # cls1 output (bias folded by BN)
    ff = heads[:, NCLS:] + fcb_ref[...]                    # folded fc output
    fc_out_ref[...] = ff * jax.nn.sigmoid(ff)              # F.silu(fc(x))

    # cls head: BN1d(256) over the batch -> SiLU -> Linear(256, 10 padded to 128)
    cm = jnp.mean(c1v, axis=0, keepdims=True)
    dc = c1v - cm
    cv = jnp.mean(dc * dc, axis=0, keepdims=True)
    cscale = jax.lax.rsqrt(cv + _BN_EPS) * cg_ref[...]
    cshift = cb_ref[...] - cm * cscale
    ca = c1v * cscale + cshift
    ca = ca * jax.nn.sigmoid(ca)
    cls_out_ref[...] = (jnp.dot(ca.astype(bf16), cls2w_ref[...],
                                preferred_element_type=f32) + cls2b_ref[...])


# ------------------------------- parameters --------------------------------

def init_params(key, flat_dim):
    ks = jax.random.split(key, 12)

    def rnd(k, shape, fan_in):
        return jax.random.normal(k, shape, jnp.float32) / math.sqrt(fan_in)

    p = {}
    # convs (biases omitted: a bias before train-mode BatchNorm is exactly
    # cancelled by the batch-mean subtraction, so it is folded away)
    p["conv1_w"] = rnd(ks[0], (32, 1, _K, _K), 1 * _K * _K)
    p["bn1_g"] = jnp.ones((32,), jnp.float32)
    p["bn1_b"] = jnp.zeros((32,), jnp.float32)
    p["conv2_w"] = rnd(ks[1], (64, 32, _K, _K), 32 * _K * _K)
    p["bn2_g"] = jnp.ones((64,), jnp.float32)
    p["bn2_b"] = jnp.zeros((64,), jnp.float32)
    # fc: LazyLinear(1024) -> LazyLinear(512) -> LazyLinear(1024)  (no activations)
    p["fc1_w"] = rnd(ks[2], (flat_dim, 1024), flat_dim)
    p["fc1_b"] = rnd(ks[3], (1024,), flat_dim)
    p["fc2_w"] = rnd(ks[4], (1024, 512), 1024)
    p["fc2_b"] = rnd(ks[5], (512,), 1024)
    p["fc3_w"] = rnd(ks[6], (512, 1024), 512)
    p["fc3_b"] = rnd(ks[7], (1024,), 512)
    # cls_head: LazyLinear(256) -> BatchNorm1d(256) -> SiLU -> LazyLinear(10)
    # (cls1 bias also folded away by the following train-mode BN)
    p["cls1_w"] = rnd(ks[8], (flat_dim, 256), flat_dim)
    p["clsbn_g"] = jnp.ones((256,), jnp.float32)
    p["clsbn_b"] = jnp.zeros((256,), jnp.float32)
    p["cls2_w"] = rnd(ks[9], (256, 10), 256)
    p["cls2_b"] = rnd(ks[10], (10,), 256)
    return p


def prepare_params(p, H, W):
    """One-time repack of the weights into kernel-friendly layouts / dtypes."""
    bf16 = jnp.bfloat16
    f32 = jnp.float32
    hi = jax.lax.Precision.HIGHEST
    C1 = p["conv1_w"].shape[0]
    C2 = p["conv2_w"].shape[0]
    PW = (W - (_K - 1)) // 2                 # pooled width (6 for W=16)
    HO2 = PW - (_K - 1)                      # conv2 output width/height (2)

    q = {}
    # conv1 as a Toeplitz matmul rhs per column-pooling-phase:
    #   w1rhs[pj, kh*W + j, oj*C1 + c] = conv1_w[c, 0, kh, j - 2*oj - pj]
    w1 = np.asarray(p["conv1_w"], np.float32).reshape(C1, _K, _K)
    w1rhs = np.zeros((2, _K * W, PW * C1), np.float32)
    for pj in range(2):
        for kh in range(_K):
            for kw in range(_K):
                for oj in range(PW):
                    j = 2 * oj + pj + kw
                    w1rhs[pj, kh * W + j, oj * C1:(oj + 1) * C1] = w1[:, kh, kw]
    q["w1rhs"] = jnp.asarray(w1rhs, bf16)
    q["g1"] = p["bn1_g"].reshape(1, C1).astype(f32)
    q["b1"] = p["bn1_b"].reshape(1, C1).astype(f32)

    # conv2 as one matmul: rhs2[kh*PW*C1 + oj*C1 + cin, tj*C2 + c2]
    #                      = conv2_w[c2, cin, kh, oj - tj]   (0 elsewhere)
    w2 = np.asarray(p["conv2_w"], np.float32)                 # [C2, C1, 5, 5]
    rhs2 = np.zeros((_K * PW * C1, HO2 * C2), np.float32)
    for kh in range(_K):
        for tj in range(HO2):
            for kw in range(_K):
                oj = tj + kw
                rhs2[kh * PW * C1 + oj * C1: kh * PW * C1 + (oj + 1) * C1,
                     tj * C2:(tj + 1) * C2] = w2[:, :, kh, kw].T
    q["rhs2"] = jnp.asarray(rhs2, bf16)
    q["g2"] = p["bn2_g"].reshape(1, C2).astype(f32)
    q["b2"] = p["bn2_b"].reshape(1, C2).astype(f32)

    # fc branch folded into one Linear (valid: no activations between fc1/fc2/fc3),
    # then concatenated with cls1's weight so both heads share one matmul.
    wf = jnp.dot(jnp.dot(p["fc1_w"], p["fc2_w"], precision=hi),
                 p["fc3_w"], precision=hi)                       # [F, 1024]
    bfold = (jnp.dot(jnp.dot(p["fc1_b"][None, :], p["fc2_w"], precision=hi),
                     p["fc3_w"], precision=hi)
             + jnp.dot(p["fc2_b"][None, :], p["fc3_w"], precision=hi)
             + p["fc3_b"][None, :])                              # [1, 1024]
    q["wcat"] = jnp.concatenate([p["cls1_w"], wf], axis=1).astype(bf16)
    q["fcb"] = bfold.astype(f32)
    q["cg"] = p["clsbn_g"].reshape(1, -1).astype(f32)
    q["cb"] = p["clsbn_b"].reshape(1, -1).astype(f32)
    ncls = p["cls2_w"].shape[1]
    q["cls2w"] = (jnp.zeros((p["cls2_w"].shape[0], _CLS_PAD), f32)
                  .at[:, :ncls].set(p["cls2_w"])).astype(bf16)
    q["cls2b"] = jnp.zeros((1, _CLS_PAD), f32).at[0, :ncls].set(p["cls2_b"])
    return q


# -------------------------------- forward ----------------------------------

def _prep_input(x, PH):
    # xcat[pi, b*PH + oi, kh*W + j] = x[b, 0, 2*oi + pi + kh, j]
    # (tiny row-phase im2col lhs for the conv1 Toeplitz matmuls; ~4 KiB bf16,
    #  no 32x channel replication).
    B, _, H, W = x.shape
    x2 = x[:, 0]                                        # [B, H, W]
    phases = []
    for pi in range(2):
        taps = []
        for kh in range(_K):
            r0 = pi + kh
            taps.append(jax.lax.slice_in_dim(x2, r0, r0 + 2 * PH - 1,
                                             stride=2, axis=1))   # [B, PH, W]
        ph = jnp.concatenate(taps, axis=-1)             # [B, PH, K*W]
        phases.append(ph.reshape(B * PH, _K * W))
    return jnp.stack(phases, 0).astype(jnp.bfloat16)    # [2, B*PH, K*W]


@jax.jit
def net_forward(q, x):
    B, _, H, W = x.shape
    PH = (H - (_K - 1)) // 2
    fc_dim = q["fcb"].shape[1]

    xcat = _prep_input(x, PH)

    vmem = pl.BlockSpec(memory_space=pltpu.MemorySpace.VMEM)
    fc_out, cls_pad = pl.pallas_call(
        _fused_net_kernel,
        out_shape=(jax.ShapeDtypeStruct((B, fc_dim), jnp.float32),
                   jax.ShapeDtypeStruct((B, _CLS_PAD), jnp.float32)),
        in_specs=[vmem] * 13,
        out_specs=(vmem, vmem),
    )(xcat, q["w1rhs"], q["g1"], q["b1"], q["rhs2"], q["g2"], q["b2"],
      q["wcat"], q["cg"], q["cb"], q["cls2w"], q["cls2b"], q["fcb"])

    return fc_out, cls_pad[:, :10]


# ---------------------------------- main ------------------------------------

if __name__ == "__main__":
    key = jax.random.PRNGKey(0)
    kx, kp = jax.random.split(key)

    B, H, W = 2, 16, 16     # 16 -> conv5 -> 12 -> pool -> 6 -> conv5 -> 2
    x = jax.random.normal(kx, (B, 1, H, W), jnp.float32)

    flat_dim = 64 * ((H - 4) // 2 - 4) * ((W - 4) // 2 - 4)   # 64*2*2 = 256
    params = init_params(kp, flat_dim)
    prep = prepare_params(params, H, W)

    fc_out, cls_out = net_forward(prep, x)
    jax.block_until_ready((fc_out, cls_out))

    assert fc_out.shape == (B, 1024) and fc_out.dtype == jnp.float32
    assert cls_out.shape == (B, 10) and cls_out.dtype == jnp.float32
    assert bool(jnp.all(jnp.isfinite(fc_out))) and bool(jnp.all(jnp.isfinite(cls_out)))
    print("KERNEL_OK")
</pallas_src>

<mosaic_0001>
module attributes {stable_mosaic.version = 11 : i64} {
  func.func @_fused_net_kernel(%arg0: memref<2x12x80xbf16, #tpu.memory_space<vmem>>, %arg1: memref<2x80x192xbf16, #tpu.memory_space<vmem>>, %arg2: memref<1x32xf32, #tpu.memory_space<vmem>>, %arg3: memref<1x32xf32, #tpu.memory_space<vmem>>, %arg4: memref<960x128xbf16, #tpu.memory_space<vmem>>, %arg5: memref<1x64xf32, #tpu.memory_space<vmem>>, %arg6: memref<1x64xf32, #tpu.memory_space<vmem>>, %arg7: memref<256x1280xbf16, #tpu.memory_space<vmem>>, %arg8: memref<1x256xf32, #tpu.memory_space<vmem>>, %arg9: memref<1x256xf32, #tpu.memory_space<vmem>>, %arg10: memref<256x128xbf16, #tpu.memory_space<vmem>>, %arg11: memref<1x128xf32, #tpu.memory_space<vmem>>, %arg12: memref<1x1024xf32, #tpu.memory_space<vmem>>, %arg13: memref<2x1024xf32, #tpu.memory_space<vmem>>, %arg14: memref<2x128xf32, #tpu.memory_space<vmem>>) attributes {dimension_semantics = [], scalar_prefetch = 0 : i64, scratch_operands = 0 : i64, tpu.core_type = #tpu.core_type<tc>} {
    %c0 = arith.constant 0 : index
    %c0_0 = arith.constant 0 : index
    %c0_1 = arith.constant 0 : index
    %0 = vector.load %arg0[%c0, %c0_0, %c0_1] : memref<2x12x80xbf16, #tpu.memory_space<vmem>>, vector<1x12x80xbf16>
    %1 = vector.shape_cast %0 : vector<1x12x80xbf16> to vector<12x80xbf16>
    %c0_2 = arith.constant 0 : index
    %c0_3 = arith.constant 0 : index
    %c0_4 = arith.constant 0 : index
    %2 = vector.load %arg1[%c0_2, %c0_3, %c0_4] : memref<2x80x192xbf16, #tpu.memory_space<vmem>>, vector<1x80x192xbf16>
    %3 = vector.shape_cast %2 : vector<1x80x192xbf16> to vector<80x192xbf16>
    %cst = arith.constant dense<0.000000e+00> : vector<12x192xf32>
    %4 = tpu.matmul %1, %3, %cst {dimension_numbers = #tpu.dot_dimension_numbers<[1], [0], [0], [1], [0, 0, 1, 1], [], []>} : vector<12x80xbf16>, vector<80x192xbf16>, vector<12x192xf32> -> vector<12x192xf32>
    %c1 = arith.constant 1 : index
    %c0_5 = arith.constant 0 : index
    %c0_6 = arith.constant 0 : index
    %5 = vector.load %arg1[%c1, %c0_5, %c0_6] : memref<2x80x192xbf16, #tpu.memory_space<vmem>>, vector<1x80x192xbf16>
    %6 = vector.shape_cast %5 : vector<1x80x192xbf16> to vector<80x192xbf16>
    %cst_7 = arith.constant dense<0.000000e+00> : vector<12x192xf32>
    %7 = tpu.matmul %1, %6, %cst_7 {dimension_numbers = #tpu.dot_dimension_numbers<[1], [0], [0], [1], [0, 0, 1, 1], [], []>} : vector<12x80xbf16>, vector<80x192xbf16>, vector<12x192xf32> -> vector<12x192xf32>
    %c1_8 = arith.constant 1 : index
    %c0_9 = arith.constant 0 : index
    %c0_10 = arith.constant 0 : index
    %8 = vector.load %arg0[%c1_8, %c0_9, %c0_10] : memref<2x12x80xbf16, #tpu.memory_space<vmem>>, vector<1x12x80xbf16>
    %9 = vector.shape_cast %8 : vector<1x12x80xbf16> to vector<12x80xbf16>
    %c0_11 = arith.constant 0 : index
    %c0_12 = arith.constant 0 : index
    %c0_13 = arith.constant 0 : index
    %10 = vector.load %arg1[%c0_11, %c0_12, %c0_13] : memref<2x80x192xbf16, #tpu.memory_space<vmem>>, vector<1x80x192xbf16>
    %11 = vector.shape_cast %10 : vector<1x80x192xbf16> to vector<80x192xbf16>
    %cst_14 = arith.constant dense<0.000000e+00> : vector<12x192xf32>
    %12 = tpu.matmul %9, %11, %cst_14 {dimension_numbers = #tpu.dot_dimension_numbers<[1], [0], [0], [1], [0, 0, 1, 1], [], []>} : vector<12x80xbf16>, vector<80x192xbf16>, vector<12x192xf32> -> vector<12x192xf32>
    %c1_15 = arith.constant 1 : index
    %c0_16 = arith.constant 0 : index
    %c0_17 = arith.constant 0 : index
    %13 = vector.load %arg1[%c1_15, %c0_16, %c0_17] : memref<2x80x192xbf16, #tpu.memory_space<vmem>>, vector<1x80x192xbf16>
    %14 = vector.shape_cast %13 : vector<1x80x192xbf16> to vector<80x192xbf16>
    %cst_18 = arith.constant dense<0.000000e+00> : vector<12x192xf32>
    %15 = tpu.matmul %9, %14, %cst_18 {dimension_numbers = #tpu.dot_dimension_numbers<[1], [0], [0], [1], [0, 0, 1, 1], [], []>} : vector<12x80xbf16>, vector<80x192xbf16>, vector<12x192xf32> -> vector<12x192xf32>
    %cst_19 = arith.constant dense<0.000000e+00> : vector<192xf32>
    %16 = vector.multi_reduction <add>, %4, %cst_19 [0] : vector<12x192xf32> to vector<192xf32>
    %17 = vector.shape_cast %16 : vector<192xf32> to vector<1x192xf32>
    %cst_20 = arith.constant dense<0.000000e+00> : vector<192xf32>
    %18 = vector.multi_reduction <add>, %7, %cst_20 [0] : vector<12x192xf32> to vector<192xf32>
    %19 = vector.shape_cast %18 : vector<192xf32> to vector<1x192xf32>
    %20 = arith.addf %17, %19 : vector<1x192xf32>
    %cst_21 = arith.constant dense<0.000000e+00> : vector<192xf32>
    %21 = vector.multi_reduction <add>, %12, %cst_21 [0] : vector<12x192xf32> to vector<192xf32>
    %22 = vector.shape_cast %21 : vector<192xf32> to vector<1x192xf32>
    %23 = arith.addf %20, %22 : vector<1x192xf32>
    %cst_22 = arith.constant dense<0.000000e+00> : vector<192xf32>
    %24 = vector.multi_reduction <add>, %15, %cst_22 [0] : vector<12x192xf32> to vector<192xf32>
    %25 = vector.shape_cast %24 : vector<192xf32> to vector<1x192xf32>
    %26 = arith.addf %23, %25 : vector<1x192xf32>
    %27 = vector.extract_strided_slice %26 {offsets = [0, 0], sizes = [1, 32], strides = [1, 1]} : vector<1x192xf32> to vector<1x32xf32>
    %28 = vector.extract_strided_slice %26 {offsets = [0, 32], sizes = [1, 32], strides = [1, 1]} : vector<1x192xf32> to vector<1x32xf32>
    %29 = arith.addf %27, %28 : vector<1x32xf32>
    %30 = vector.extract_strided_slice %26 {offsets = [0, 64], sizes = [1, 32], strides = [1, 1]} : vector<1x192xf32> to vector<1x32xf32>
    %31 = arith.addf %29, %30 : vector<1x32xf32>
    %32 = vector.extract_strided_slice %26 {offsets = [0, 96], sizes = [1, 32], strides = [1, 1]} : vector<1x192xf32> to vector<1x32xf32>
    %33 = arith.addf %31, %32 : vector<1x32xf32>
    %34 = vector.extract_strided_slice %26 {offsets = [0, 128], sizes = [1, 32], strides = [1, 1]} : vector<1x192xf32> to vector<1x32xf32>
    %35 = arith.addf %33, %34 : vector<1x32xf32>
    %36 = vector.extract_strided_slice %26 {offsets = [0, 160], sizes = [1, 32], strides = [1, 1]} : vector<1x192xf32> to vector<1x32xf32>
    %37 = arith.addf %35, %36 : vector<1x32xf32>
    %cst_23 = arith.constant 2.880000e+02 : f32
    %38 = vector.broadcast %cst_23 : f32 to vector<1x32xf32>
    %39 = arith.divf %37, %38 : vector<1x32xf32>
    %40 = tpu.concatenate %39, %39, %39, %39, %39, %39 in 1 : vector<1x32xf32>, vector<1x32xf32>, vector<1x32xf32>, vector<1x32xf32>, vector<1x32xf32>, vector<1x32xf32> -> vector<1x192xf32>
    %41 = vector.broadcast %40 : vector<1x192xf32> to vector<12x192xf32>
    %42 = arith.subf %4, %41 : vector<12x192xf32>
    %43 = arith.mulf %42, %42 : vector<12x192xf32>
    %cst_24 = arith.constant dense<0.000000e+00> : vector<192xf32>
    %44 = vector.multi_reduction <add>, %43, %cst_24 [0] : vector<12x192xf32> to vector<192xf32>
    %45 = vector.shape_cast %44 : vector<192xf32> to vector<1x192xf32>
    %46 = vector.broadcast %40 : vector<1x192xf32> to vector<12x192xf32>
    %47 = arith.subf %7, %46 : vector<12x192xf32>
    %48 = arith.mulf %47, %47 : vector<12x192xf32>
    %cst_25 = arith.constant dense<0.000000e+00> : vector<192xf32>
    %49 = vector.multi_reduction <add>, %48, %cst_25 [0] : vector<12x192xf32> to vector<192xf32>
    %50 = vector.shape_cast %49 : vector<192xf32> to vector<1x192xf32>
    %51 = arith.addf %45, %50 : vector<1x192xf32>
    %52 = vector.broadcast %40 : vector<1x192xf32> to vector<12x192xf32>
    %53 = arith.subf %12, %52 : vector<12x192xf32>
    %54 = arith.mulf %53, %53 : vector<12x192xf32>
    %cst_26 = arith.constant dense<0.000000e+00> : vector<192xf32>
    %55 = vector.multi_reduction <add>, %54, %cst_26 [0] : vector<12x192xf32> to vector<192xf32>
    %56 = vector.shape_cast %55 : vector<192xf32> to vector<1x192xf32>
    %57 = arith.addf %51, %56 : vector<1x192xf32>
    %58 = vector.broadcast %40 : vector<1x192xf32> to vector<12x192xf32>
    %59 = arith.subf %15, %58 : vector<12x192xf32>
    %60 = arith.mulf %59, %59 : vector<12x192xf32>
    %cst_27 = arith.constant dense<0.000000e+00> : vector<192xf32>
    %61 = vector.multi_reduction <add>, %60, %cst_27 [0] : vector<12x192xf32> to vector<192xf32>
    %62 = vector.shape_cast %61 : vector<192xf32> to vector<1x192xf32>
    %63 = arith.addf %57, %62 : vector<1x192xf32>
    %64 = vector.extract_strided_slice %63 {offsets = [0, 0], sizes = [1, 32], strides = [1, 1]} : vector<1x192xf32> to vector<1x32xf32>
    %65 = vector.extract_strided_slice %63 {offsets = [0, 32], sizes = [1, 32], strides = [1, 1]} : vector<1x192xf32> to vector<1x32xf32>
    %66 = arith.addf %64, %65 : vector<1x32xf32>
    %67 = vector.extract_strided_slice %63 {offsets = [0, 64], sizes = [1, 32], strides = [1, 1]} : vector<1x192xf32> to vector<1x32xf32>
    %68 = arith.addf %66, %67 : vector<1x32xf32>
    %69 = vector.extract_strided_slice %63 {offsets = [0, 96], sizes = [1, 32], strides = [1, 1]} : vector<1x192xf32> to vector<1x32xf32>
    %70 = arith.addf %68, %69 : vector<1x32xf32>
    %71 = vector.extract_strided_slice %63 {offsets = [0, 128], sizes = [1, 32], strides = [1, 1]} : vector<1x192xf32> to vector<1x32xf32>
    %72 = arith.addf %70, %71 : vector<1x32xf32>
    %73 = vector.extract_strided_slice %63 {offsets = [0, 160], sizes = [1, 32], strides = [1, 1]} : vector<1x192xf32> to vector<1x32xf32>
    %74 = arith.addf %72, %73 : vector<1x32xf32>
    %cst_28 = arith.constant 2.880000e+02 : f32
    %75 = vector.broadcast %cst_28 : f32 to vector<1x32xf32>
    %76 = arith.divf %74, %75 : vector<1x32xf32>
    %cst_29 = arith.constant 9.99999974E-6 : f32
    %77 = vector.broadcast %cst_29 : f32 to vector<1x32xf32>
    %78 = arith.addf %76, %77 : vector<1x32xf32>
    %79 = math.rsqrt %78 : vector<1x32xf32>
    %c0_30 = arith.constant 0 : index
    %c0_31 = arith.constant 0 : index
    %80 = vector.load %arg2[%c0_30, %c0_31] : memref<1x32xf32, #tpu.memory_space<vmem>>, vector<1x32xf32>
    %81 = arith.mulf %79, %80 : vector<1x32xf32>
    %c0_32 = arith.constant 0 : index
    %c0_33 = arith.constant 0 : index
    %82 = vector.load %arg3[%c0_32, %c0_33] : memref<1x32xf32, #tpu.memory_space<vmem>>, vector<1x32xf32>
    %83 = arith.mulf %39, %81 : vector<1x32xf32>
    %84 = arith.subf %82, %83 : vector<1x32xf32>
    %85 = tpu.concatenate %81, %81, %81, %81, %81, %81 in 1 : vector<1x32xf32>, vector<1x32xf32>, vector<1x32xf32>, vector<1x32xf32>, vector<1x32xf32>, vector<1x32xf32> -> vector<1x192xf32>
    %86 = tpu.concatenate %84, %84, %84, %84, %84, %84 in 1 : vector<1x32xf32>, vector<1x32xf32>, vector<1x32xf32>, vector<1x32xf32>, vector<1x32xf32>, vector<1x32xf32> -> vector<1x192xf32>
    %87 = vector.broadcast %85 : vector<1x192xf32> to vector<12x192xf32>
    %88 = arith.mulf %4, %87 : vector<12x192xf32>
    %89 = vector.broadcast %86 : vector<1x192xf32> to vector<12x192xf32>
    %90 = arith.addf %88, %89 : vector<12x192xf32>
    %91 = arith.negf %90 : vector<12x192xf32>
    %92 = math.exp %91 : vector<12x192xf32>
    %cst_34 = arith.constant 1.000000e+00 : f32
    %93 = vector.broadcast %cst_34 : f32 to vector<12x192xf32>
    %94 = arith.addf %93, %92 : vector<12x192xf32>
    %95 = arith.divf %93, %94 : vector<12x192xf32>
    %96 = arith.mulf %90, %95 : vector<12x192xf32>
    %97 = vector.broadcast %85 : vector<1x192xf32> to vector<12x192xf32>
    %98 = arith.mulf %7, %97 : vector<12x192xf32>
    %99 = vector.broadcast %86 : vector<1x192xf32> to vector<12x192xf32>
    %100 = arith.addf %98, %99 : vector<12x192xf32>
    %101 = arith.negf %100 : vector<12x192xf32>
    %102 = math.exp %101 : vector<12x192xf32>
    %cst_35 = arith.constant 1.000000e+00 : f32
    %103 = vector.broadcast %cst_35 : f32 to vector<12x192xf32>
    %104 = arith.addf %103, %102 : vector<12x192xf32>
    %105 = arith.divf %103, %104 : vector<12x192xf32>
    %106 = arith.mulf %100, %105 : vector<12x192xf32>
    %107 = arith.maximumf %96, %106 : vector<12x192xf32>
    %108 = vector.broadcast %85 : vector<1x192xf32> to vector<12x192xf32>
    %109 = arith.mulf %12, %108 : vector<12x192xf32>
    %110 = vector.broadcast %86 : vector<1x192xf32> to vector<12x192xf32>
    %111 = arith.addf %109, %110 : vector<12x192xf32>
    %112 = arith.negf %111 : vector<12x192xf32>
    %113 = math.exp %112 : vector<12x192xf32>
    %cst_36 = arith.constant 1.000000e+00 : f32
    %114 = vector.broadcast %cst_36 : f32 to vector<12x192xf32>
    %115 = arith.addf %114, %113 : vector<12x192xf32>
    %116 = arith.divf %114, %115 : vector<12x192xf32>
    %117 = arith.mulf %111, %116 : vector<12x192xf32>
    %118 = arith.maximumf %107, %117 : vector<12x192xf32>
    %119 = vector.broadcast %85 : vector<1x192xf32> to vector<12x192xf32>
    %120 = arith.mulf %15, %119 : vector<12x192xf32>
    %121 = vector.broadcast %86 : vector<1x192xf32> to vector<12x192xf32>
    %122 = arith.addf %120, %121 : vector<12x192xf32>
    %123 = arith.negf %122 : vector<12x192xf32>
    %124 = math.exp %123 : vector<12x192xf32>
    %cst_37 = arith.constant 1.000000e+00 : f32
    %125 = vector.broadcast %cst_37 : f32 to vector<12x192xf32>
    %126 = arith.addf %125, %124 : vector<12x192xf32>
    %127 = arith.divf %125, %126 : vector<12x192xf32>
    %128 = arith.mulf %122, %127 : vector<12x192xf32>
    %129 = arith.maximumf %118, %128 : vector<12x192xf32>
    %130 = vector.extract_strided_slice %129 {offsets = [0, 0], sizes = [2, 192], strides = [1, 1]} : vector<12x192xf32> to vector<2x192xf32>
    %131 = vector.extract_strided_slice %129 {offsets = [6, 0], sizes = [2, 192], strides = [1, 1]} : vector<12x192xf32> to vector<2x192xf32>
    %132 = tpu.concatenate %130, %131 in 0 : vector<2x192xf32>, vector<2x192xf32> -> vector<4x192xf32>
    %133 = vector.extract_strided_slice %129 {offsets = [1, 0], sizes = [2, 192], strides = [1, 1]} : vector<12x192xf32> to vector<2x192xf32>
    %134 = vector.extract_strided_slice %129 {offsets = [7, 0], sizes = [2, 192], strides = [1, 1]} : vector<12x192xf32> to vector<2x192xf32>
    %135 = tpu.concatenate %133, %134 in 0 : vector<2x192xf32>, vector<2x192xf32> -> vector<4x192xf32>
    %136 = vector.extract_strided_slice %129 {offsets = [2, 0], sizes = [2, 192], strides = [1, 1]} : vector<12x192xf32> to vector<2x192xf32>
    %137 = vector.extract_strided_slice %129 {offsets = [8, 0], sizes = [2, 192], strides = [1, 1]} : vector<12x192xf32> to vector<2x192xf32>
    %138 = tpu.concatenate %136, %137 in 0 : vector<2x192xf32>, vector<2x192xf32> -> vector<4x192xf32>
    %139 = vector.extract_strided_slice %129 {offsets = [3, 0], sizes = [2, 192], strides = [1, 1]} : vector<12x192xf32> to vector<2x192xf32>
    %140 = vector.extract_strided_slice %129 {offsets = [9, 0], sizes = [2, 192], strides = [1, 1]} : vector<12x192xf32> to vector<2x192xf32>
    %141 = tpu.concatenate %139, %140 in 0 : vector<2x192xf32>, vector<2x192xf32> -> vector<4x192xf32>
    %142 = vector.extract_strided_slice %129 {offsets = [4, 0], sizes = [2, 192], strides = [1, 1]} : vector<12x192xf32> to vector<2x192xf32>
    %143 = vector.extract_strided_slice %129 {offsets = [10, 0], sizes = [2, 192], strides = [1, 1]} : vector<12x192xf32> to vector<2x192xf32>
    %144 = tpu.concatenate %142, %143 in 0 : vector<2x192xf32>, vector<2x192xf32> -> vector<4x192xf32>
    %145 = tpu.concatenate %132, %135, %138, %141, %144 in 1 : vector<4x192xf32>, vector<4x192xf32>, vector<4x192xf32>, vector<4x192xf32>, vector<4x192xf32> -> vector<4x960xf32>
    %146 = arith.truncf %145 : vector<4x960xf32> to vector<4x960xbf16>
    %c0_38 = arith.constant 0 : index
    %c0_39 = arith.constant 0 : index
    %147 = vector.load %arg4[%c0_38, %c0_39] : memref<960x128xbf16, #tpu.memory_space<vmem>>, vector<960x128xbf16>
    %cst_40 = arith.constant dense<0.000000e+00> : vector<4x128xf32>
    %148 = tpu.matmul %146, %147, %cst_40 {dimension_numbers = #tpu.dot_dimension_numbers<[1], [0], [0], [1], [0, 0, 1, 1], [], []>} : vector<4x960xbf16>, vector<960x128xbf16>, vector<4x128xf32> -> vector<4x128xf32>
    %cst_41 = arith.constant dense<0.000000e+00> : vector<128xf32>
    %149 = vector.multi_reduction <add>, %148, %cst_41 [0] : vector<4x128xf32> to vector<128xf32>
    %150 = vector.shape_cast %149 : vector<128xf32> to vector<1x128xf32>
    %151 = vector.extract_strided_slice %150 {offsets = [0, 0], sizes = [1, 64], strides = [1, 1]} : vector<1x128xf32> to vector<1x64xf32>
    %152 = vector.extract_strided_slice %150 {offsets = [0, 64], sizes = [1, 64], strides = [1, 1]} : vector<1x128xf32> to vector<1x64xf32>
    %153 = arith.addf %151, %152 : vector<1x64xf32>
    %cst_42 = arith.constant 8.000000e+00 : f32
    %154 = vector.broadcast %cst_42 : f32 to vector<1x64xf32>
    %155 = arith.divf %153, %154 : vector<1x64xf32>
    %156 = tpu.concatenate %155, %155 in 1 : vector<1x64xf32>, vector<1x64xf32> -> vector<1x128xf32>
    %157 = vector.broadcast %156 : vector<1x128xf32> to vector<4x128xf32>
    %158 = arith.subf %148, %157 : vector<4x128xf32>
    %159 = arith.mulf %158, %158 : vector<4x128xf32>
    %cst_43 = arith.constant dense<0.000000e+00> : vector<128xf32>
    %160 = vector.multi_reduction <add>, %159, %cst_43 [0] : vector<4x128xf32> to vector<128xf32>
    %161 = vector.shape_cast %160 : vector<128xf32> to vector<1x128xf32>
    %162 = vector.extract_strided_slice %161 {offsets = [0, 0], sizes = [1, 64], strides = [1, 1]} : vector<1x128xf32> to vector<1x64xf32>
    %163 = vector.extract_strided_slice %161 {offsets = [0, 64], sizes = [1, 64], strides = [1, 1]} : vector<1x128xf32> to vector<1x64xf32>
    %164 = arith.addf %162, %163 : vector<1x64xf32>
    %cst_44 = arith.constant 8.000000e+00 : f32
    %165 = vector.broadcast %cst_44 : f32 to vector<1x64xf32>
    %166 = arith.divf %164, %165 : vector<1x64xf32>
    %cst_45 = arith.constant 9.99999974E-6 : f32
    %167 = vector.broadcast %cst_45 : f32 to vector<1x64xf32>
    %168 = arith.addf %166, %167 : vector<1x64xf32>
    %169 = math.rsqrt %168 : vector<1x64xf32>
    %c0_46 = arith.constant 0 : index
    %c0_47 = arith.constant 0 : index
    %170 = vector.load %arg5[%c0_46, %c0_47] : memref<1x64xf32, #tpu.memory_space<vmem>>, vector<1x64xf32>
    %171 = arith.mulf %169, %170 : vector<1x64xf32>
    %c0_48 = arith.constant 0 : index
    %c0_49 = arith.constant 0 : index
    %172 = vector.load %arg6[%c0_48, %c0_49] : memref<1x64xf32, #tpu.memory_space<vmem>>, vector<1x64xf32>
    %173 = arith.mulf %155, %171 : vector<1x64xf32>
    %174 = arith.subf %172, %173 : vector<1x64xf32>
    %175 = tpu.concatenate %171, %171 in 1 : vector<1x64xf32>, vector<1x64xf32> -> vector<1x128xf32>
    %176 = vector.broadcast %175 : vector<1x128xf32> to vector<4x128xf32>
    %177 = arith.mulf %148, %176 : vector<4x128xf32>
    %178 = tpu.concatenate %174, %174 in 1 : vector<1x64xf32>, vector<1x64xf32> -> vector<1x128xf32>
    %179 = vector.broadcast %178 : vector<1x128xf32> to vector<4x128xf32>
    %180 = arith.addf %177, %179 : vector<4x128xf32>
    %181 = arith.negf %180 : vector<4x128xf32>
    %182 = math.exp %181 : vector<4x128xf32>
    %cst_50 = arith.constant 1.000000e+00 : f32
    %183 = vector.broadcast %cst_50 : f32 to vector<4x128xf32>
    %184 = arith.addf %183, %182 : vector<4x128xf32>
    %185 = arith.divf %183, %184 : vector<4x128xf32>
    %186 = arith.mulf %180, %185 : vector<4x128xf32>
    %187 = vector.extract_strided_slice %186 {offsets = [0, 0], sizes = [1, 128], strides = [1, 1]} : vector<4x128xf32> to vector<1x128xf32>
    %188 = vector.extract_strided_slice %186 {offsets = [1, 0], sizes = [1, 128], strides = [1, 1]} : vector<4x128xf32> to vector<1x128xf32>
    %189 = tpu.concatenate %187, %188 in 1 : vector<1x128xf32>, vector<1x128xf32> -> vector<1x256xf32>
    %190 = vector.extract_strided_slice %186 {offsets = [2, 0], sizes = [1, 128], strides = [1, 1]} : vector<4x128xf32> to vector<1x128xf32>
    %191 = vector.extract_strided_slice %186 {offsets = [3, 0], sizes = [1, 128], strides = [1, 1]} : vector<4x128xf32> to vector<1x128xf32>
    %192 = tpu.concatenate %190, %191 in 1 : vector<1x128xf32>, vector<1x128xf32> -> vector<1x256xf32>
    %193 = tpu.concatenate %189, %192 in 0 : vector<1x256xf32>, vector<1x256xf32> -> vector<2x256xf32>
    %194 = arith.truncf %193 : vector<2x256xf32> to vector<2x256xbf16>
    %c0_51 = arith.constant 0 : index
    %c0_52 = arith.constant 0 : index
    %195 = vector.load %arg7[%c0_51, %c0_52] : memref<256x1280xbf16, #tpu.memory_space<vmem>>, vector<256x1280xbf16>
    %cst_53 = arith.constant dense<0.000000e+00> : vector<2x1280xf32>
    %196 = tpu.matmul %194, %195, %cst_53 {dimension_numbers = #tpu.dot_dimension_numbers<[1], [0], [0], [1], [0, 0, 1, 1], [], []>} : vector<2x256xbf16>, vector<256x1280xbf16>, vector<2x1280xf32> -> vector<2x1280xf32>
    %197 = vector.extract_strided_slice %196 {offsets = [0, 0], sizes = [2, 256], strides = [1, 1]} : vector<2x1280xf32> to vector<2x256xf32>
    %198 = vector.extract_strided_slice %196 {offsets = [0, 256], sizes = [2, 1024], strides = [1, 1]} : vector<2x1280xf32> to vector<2x1024xf32>
    %c0_54 = arith.constant 0 : index
    %c0_55 = arith.constant 0 : index
    %199 = vector.load %arg12[%c0_54, %c0_55] : memref<1x1024xf32, #tpu.memory_space<vmem>>, vector<1x1024xf32>
    %200 = vector.broadcast %199 : vector<1x1024xf32> to vector<2x1024xf32>
    %201 = arith.addf %198, %200 : vector<2x1024xf32>
    %202 = arith.negf %201 : vector<2x1024xf32>
    %203 = math.exp %202 : vector<2x1024xf32>
    %cst_56 = arith.constant 1.000000e+00 : f32
    %204 = vector.broadcast %cst_56 : f32 to vector<2x1024xf32>
    %205 = arith.addf %204, %203 : vector<2x1024xf32>
    %206 = arith.divf %204, %205 : vector<2x1024xf32>
    %207 = arith.mulf %201, %206 : vector<2x1024xf32>
    %c0_57 = arith.constant 0 : index
    %c0_58 = arith.constant 0 : index
    %208 = vector.load %arg13[%c0_57, %c0_58] : memref<2x1024xf32, #tpu.memory_space<vmem>>, vector<2x1024xf32>
    tpu.vector_store %arg13[%c0_57, %c0_58], %207 {strides = array<i32>} : memref<2x1024xf32, #tpu.memory_space<vmem>>, vector<2x1024xf32>,
    %cst_59 = arith.constant dense<0.000000e+00> : vector<256xf32>
    %209 = vector.multi_reduction <add>, %197, %cst_59 [0] : vector<2x256xf32> to vector<256xf32>
    %210 = vector.shape_cast %209 : vector<256xf32> to vector<1x256xf32>
    %cst_60 = arith.constant 2.000000e+00 : f32
    %211 = vector.broadcast %cst_60 : f32 to vector<1x256xf32>
    %212 = arith.divf %210, %211 : vector<1x256xf32>
    %213 = vector.broadcast %212 : vector<1x256xf32> to vector<2x256xf32>
    %214 = arith.subf %197, %213 : vector<2x256xf32>
    %215 = arith.mulf %214, %214 : vector<2x256xf32>
    %cst_61 = arith.constant dense<0.000000e+00> : vector<256xf32>
    %216 = vector.multi_reduction <add>, %215, %cst_61 [0] : vector<2x256xf32> to vector<256xf32>
    %217 = vector.shape_cast %216 : vector<256xf32> to vector<1x256xf32>
    %cst_62 = arith.constant 2.000000e+00 : f32
    %218 = vector.broadcast %cst_62 : f32 to vector<1x256xf32>
    %219 = arith.divf %217, %218 : vector<1x256xf32>
    %cst_63 = arith.constant 9.99999974E-6 : f32
    %220 = vector.broadcast %cst_63 : f32 to vector<1x256xf32>
    %221 = arith.addf %219, %220 : vector<1x256xf32>
    %222 = math.rsqrt %221 : vector<1x256xf32>
    %c0_64 = arith.constant 0 : index
    %c0_65 = arith.constant 0 : index
    %223 = vector.load %arg8[%c0_64, %c0_65] : memref<1x256xf32, #tpu.memory_space<vmem>>, vector<1x256xf32>
    %224 = arith.mulf %222, %223 : vector<1x256xf32>
    %c0_66 = arith.constant 0 : index
    %c0_67 = arith.constant 0 : index
    %225 = vector.load %arg9[%c0_66, %c0_67] : memref<1x256xf32, #tpu.memory_space<vmem>>, vector<1x256xf32>
    %226 = arith.mulf %212, %224 : vector<1x256xf32>
    %227 = arith.subf %225, %226 : vector<1x256xf32>
    %228 = vector.broadcast %224 : vector<1x256xf32> to vector<2x256xf32>
    %229 = arith.mulf %197, %228 : vector<2x256xf32>
    %230 = vector.broadcast %227 : vector<1x256xf32> to vector<2x256xf32>
    %231 = arith.addf %229, %230 : vector<2x256xf32>
    %232 = arith.negf %231 : vector<2x256xf32>
    %233 = math.exp %232 : vector<2x256xf32>
    %cst_68 = arith.constant 1.000000e+00 : f32
    %234 = vector.broadcast %cst_68 : f32 to vector<2x256xf32>
    %235 = arith.addf %234, %233 : vector<2x256xf32>
    %236 = arith.divf %234, %235 : vector<2x256xf32>
    %237 = arith.mulf %231, %236 : vector<2x256xf32>
    %238 = arith.truncf %237 : vector<2x256xf32> to vector<2x256xbf16>
    %c0_69 = arith.constant 0 : index
    %c0_70 = arith.constant 0 : index
    %239 = vector.load %arg10[%c0_69, %c0_70] : memref<256x128xbf16, #tpu.memory_space<vmem>>, vector<256x128xbf16>
    %cst_71 = arith.constant dense<0.000000e+00> : vector<2x128xf32>
    %240 = tpu.matmul %238, %239, %cst_71 {dimension_numbers = #tpu.dot_dimension_numbers<[1], [0], [0], [1], [0, 0, 1, 1], [], []>} : vector<2x256xbf16>, vector<256x128xbf16>, vector<2x128xf32> -> vector<2x128xf32>
    %c0_72 = arith.constant 0 : index
    %c0_73 = arith.constant 0 : index
    %241 = vector.load %arg11[%c0_72, %c0_73] : memref<1x128xf32, #tpu.memory_space<vmem>>, vector<1x128xf32>
    %242 = vector.broadcast %241 : vector<1x128xf32> to vector<2x128xf32>
    %243 = arith.addf %240, %242 : vector<2x128xf32>
    %c0_74 = arith.constant 0 : index
    %c0_75 = arith.constant 0 : index
    %244 = vector.load %arg14[%c0_74, %c0_75] : memref<2x128xf32, #tpu.memory_space<vmem>>, vector<2x128xf32>
    tpu.vector_store %arg14[%c0_74, %c0_75], %243 {strides = array<i32>} : memref<2x128xf32, #tpu.memory_space<vmem>>, vector<2x128xf32>,
    return
  }
}

</mosaic_0001>

<bundles_post_ra>
// kernel: net_forward.1
= control target key start
LH: loop header
LB: loop body
LE: loop exit
PB: predicated region body
PF: predicated region fallthrough
CT: control target
= control target key end

     0   :  { %20 = vsyncpa [#allocation3], 0  ;;  %s4967_s0 = inlined_call_operand.vmem [shape: bf16[2,12,80], index: 0, kind: input, shape index: {}]   ;;  %s4968_s1 = inlined_call_operand.vmem [shape: bf16[2,80,192], index: 1, kind: input, shape index: {}]   ;;  %s4969_s2 = inlined_call_operand.vmem [shape: f32[1,32], index: 2, kind: input, shape index: {}]   ;;  %s4970_s3 = inlined_call_operand.vmem [shape: f32[1,32], index: 3, kind: input, shape index: {}]   ;;  %s4971_s4 = inlined_call_operand.hbm [shape: bf16[960,128], index: 4, kind: input, shape index: {}]   ;;  %s4972_s5 = inlined_call_operand.vmem [shape: f32[1,64], index: 5, kind: input, shape index: {}]   ;;  %s4973_s6 = inlined_call_operand.vmem [shape: f32[1,64], index: 6, kind: input, shape index: {}]   ;;  %s4974_s7 = inlined_call_operand.hbm [shape: bf16[256,1280], index: 7, kind: input, shape index: {}]   ;;  %s4975_s8 = inlined_call_operand.vmem [shape: f32[1,256], index: 8, kind: input, shape index: {}]   ;;  %s4976_s9 = inlined_call_operand.vmem [shape: f32[1,256], index: 9, kind: input, shape index: {}]   ;;  %s4977_s10 = inlined_call_operand.vmem [shape: bf16[256,128], index: 10, kind: input, shape index: {}]   ;;  %s4978_s11 = inlined_call_operand.vmem [shape: f32[1,128], index: 11, kind: input, shape index: {}]   ;;  %s4979_s12 = inlined_call_operand.vmem [shape: f32[1,1024], index: 12, kind: input, shape index: {}]   ;;  %s4980_s13 = inlined_call_operand.hbm [shape: f32[2,1024], index: 13, kind: output, shape index: {0}]   ;;  %s4981_s14 = inlined_call_operand.hbm [shape: f32[2,128], index: 14, kind: output, shape index: {1}]  }
   0x1   :  { %21 = vsyncpa [#allocation6], 0 }
   0x2   :  { %22 = vsyncpa [#allocation4], 0 }
   0x3   :  { %23 = vsyncpa [#allocation9], 0  ;;  %s4266_s29 = smov [#allocation2]   ;;  %s4170_s17 = scalar_lea.hbm %s4971_s4, 7680 }
   0x4   :  { %s37_s30 = sshll.u32 %s4266_s29, 4  ;;  %p4171_p0 = scmp.ne.s32.totalorder %s4971_s4, %s4170_s17  ;;  %s38_s30 = int_to_ptr.vmem [resolvable:$true] %s37_s30 }
   0x5   :  { %p4174_p1 = scmp.lt.u32.totalorder %s4170_s17, %s4971_s4 }
   0x7   :  { %p4176_p2 = pnand %p4174_p1, %p4171_p0 }
   0x9   :  { %4179 = shalt.err (!%p4176_p2)
}
   0xa   :  { %s4180_s22 = scalar_lea.vmem %s38_s30, 7680  ;;  %p4185_p4 = scmp.lt.s32.totalorder %s38_s30, %s38_s30 }
   0xb   :  { %p4181_p3 = scmp.ne.s32.totalorder %s38_s30, %s4180_s22  ;;  %p4186_p5 = scmp.lt.s32.totalorder %s4180_s22, %s4180_s22 }
   0xd   :  { %p4187_p6 = por %p4186_p5, %p4185_p4 }
   0xf   :  { %p4188_p7 = pnand %p4187_p6, %p4181_p3 }
  0x11   :  { %4191 = shalt.err (!%p4188_p7)
}
  0x12   :  { %s4267_s23 = smov 64   ;;  %s4268_s24 = smov 4  }
  0x13   :  { %43 = dma.hbm_to_vmem [thread:$0]  %s4971_s4, 7680, %s38_s30, [#allocation3], %s4267_s23, %s4267_s23, %s4268_s24  }
  0x14   :  { %s4269_s27 = smov [#allocation5]   ;;  %s4192_s16 = scalar_lea.hbm %s4974_s7, 20480 }
  0x15   :  { %s53_s28 = sshll.u32 %s4269_s27, 4  ;;  %p4193_p8 = scmp.ne.s32.totalorder %s4974_s7, %s4192_s16  ;;  %s54_s28 = int_to_ptr.vmem [resolvable:$true] %s53_s28 }
  0x16   :  { %p4196_p9 = scmp.lt.u32.totalorder %s4192_s16, %s4974_s7 }
  0x18   :  { %p4198_p10 = pnand %p4196_p9, %p4193_p8 }
  0x1a   :  { %4201 = shalt.err (!%p4198_p10)
}
  0x1b   :  { %s4202_s21 = scalar_lea.vmem %s54_s28, 20480  ;;  %p4207_p12 = scmp.lt.s32.totalorder %s54_s28, %s54_s28 }
  0x1c   :  { %p4203_p11 = scmp.ne.s32.totalorder %s54_s28, %s4202_s21  ;;  %p4208_p13 = scmp.lt.s32.totalorder %s4202_s21, %s4202_s21 }
  0x1e   :  { %p4209_p0 = por %p4208_p13, %p4207_p12 }
  0x20   :  { %p4210_p1 = pnand %p4209_p0, %p4203_p11 }
  0x22   :  { %4213 = shalt.err (!%p4210_p1)
}
  0x23   :  { %s4270_s4 = smov 640   ;;  %s4271_s30 = smov 40  }
  0x24   :  { %59 = dma.hbm_to_vmem [thread:$0]  %s4974_s7, 20480, %s54_s28, [#allocation6], %s4270_s4, %s4270_s4, %s4271_s30  }
  0x25   :  { %4258 = dma.done.wait [#allocation3], 7680  }
  0x26   :  { %4259 = vsyncadd [#allocation3], 4294959616 }
  0x27   :  { %4260 = dma.done.wait [#allocation6], 20480  }
  0x28   :  { %4261 = vsyncadd [#allocation6], 4294946816  ;;  %v4272_v0 = vmov 0   ;;  %v3706_v1 = vld [vmem:[%s4968_s1 + $0x4] ss:$8 sps:$4 sm:$0xff]   ;;  %vm144_vm0 = vcmask 654336  }
  0x29   :  { %180 = vmatprep.mubr.bf16.mxu0 %v4272_v0  ;;  %284 = vmatprep.mubr.bf16.mxu1 %v4272_v0  ;;  %v3708_v2 = vld [vmem:[%s4968_s1 + $0x54] ss:$8 sps:$4 sm:$0xff]   ;;  %v3710_v3 = vld [vmem:[%s4968_s1] ss:$8 sps:$4 sm:$0xff]   ;;  %v3711_v4 = vld [vmem:[%s4968_s1 + $0x50] ss:$8 sps:$4 sm:$0xff]  }
  0x2a   :  { %148 = vmatprep.subr.bf16.mxu0 %v3706_v1  ;;  %252 = vmatprep.subr.bf16.mxu1 %v3708_v2  ;;  %v3712_v5 = vld [vmem:[%s4968_s1 + $0x14] ss:$8 sps:$4 sm:$0xff]   ;;  %v3714_v6 = vld [vmem:[%s4968_s1 + $0x64] ss:$8 sps:$4 sm:$0xff]   ;;  %v3716_v7 = vld [vmem:[%s4968_s1 + $0x10] ss:$8 sps:$4 sm:$0xff]  }
  0x2b   :  { %149 = vmatpush1.bf16.msra.mxu0 %v3710_v3  ;;  %253 = vmatpush1.bf16.msra.mxu1 %v3711_v4  ;;  %v3717_v8 = vld [vmem:[%s4968_s1 + $0x60] ss:$8 sps:$4 sm:$0xff]   ;;  %v3718_v9 = vld [vmem:[%s4968_s1 + $0x24] ss:$8 sps:$4 sm:$0xff]   ;;  %v3720_v10 = vld [vmem:[%s4968_s1 + $0x74] ss:$8 sps:$4 sm:$0xff]  }
  0x2c   :  { %150 = vmatprep.subr.bf16.mxu0 %v3712_v5  ;;  %254 = vmatprep.subr.bf16.mxu1 %v3714_v6  ;;  %v3722_v11 = vld [vmem:[%s4968_s1 + $0x20] ss:$8 sps:$4 sm:$0xff]   ;;  %v3723_v12 = vld [vmem:[%s4968_s1 + $0x70] ss:$8 sps:$4 sm:$0xff]   ;;  %v3724_v13 = vld [vmem:[%s4968_s1 + $0x34] ss:$8 sps:$4 sm:$0xff]  }
  0x2d   :  { %v3726_v14 = vld [vmem:[%s4968_s1 + $0x84] ss:$8 sps:$4 sm:$0xff]   ;;  %v3728_v15 = vld [vmem:[%s4968_s1 + $0x30] ss:$8 sps:$4 sm:$0xff]   ;;  %v3729_v16 = vld [vmem:[%s4968_s1 + $0x80] ss:$8 sps:$4 sm:$0xff]  }
  0x2e   :  { %v3730_v17 = vld [vmem:[%s4968_s1 + $0x44] ss:$8 sps:$4 sm:$0xff]   ;;  %v3732_v18 = vld [vmem:[%s4968_s1 + $0x94] ss:$8 sps:$4 sm:$0xff]   ;;  %v3734_v19 = vld [vmem:[%s4968_s1 + $0x40] ss:$8 sps:$4 sm:$0xff]  }
  0x2f   :  { %151 = vmatpush1.bf16.msra.mxu0 %v3716_v7  ;;  %255 = vmatpush1.bf16.msra.mxu1 %v3717_v8  ;;  %v3735_v20 = vld [vmem:[%s4968_s1 + $0x90] ss:$8 sps:$4 sm:$0xff]   ;;  %v3736_v21 = vld [vmem:[%s4967_s0] sm:$0x3f]   ;;  %v3737_v22 = vld [vmem:[%s4967_s0 + $0x8] sm:$0x3f]  }
  0x30   :  { %152 = vmatprep.subr.bf16.mxu0 %v3718_v9  ;;  %256 = vmatprep.subr.bf16.mxu1 %v3720_v10  ;;  %vm401_vm1 = vcmask 523264   ;;  %vm392_vm2 = vcmask 1043456   ;;  %vm403_vm3 = vcmask 519168   ;;  %s4273_s0 = smov 32   ;;  %s4274_s18 = smov 96   ;;  %vm500_vm4 = vcmask 261120  }
  0x31   :  { %vm503_vm5 = vcmask 785408   ;;  %vm854_vm6 = vcmask 1041408   ;;  %vm863_vm7 = vcmask 1042432   ;;  %vm1648_vm8 = vcmask 1040384  }
  0x33   :  { %153 = vmatpush1.bf16.msra.mxu0 %v3722_v11  ;;  %257 = vmatpush1.bf16.msra.mxu1 %v3723_v12 }
  0x34   :  { %154 = vmatprep.subr.bf16.mxu0 %v3724_v13  ;;  %258 = vmatprep.subr.bf16.mxu1 %v3726_v14 }
  0x37   :  { %155 = vmatpush1.bf16.msra.mxu0 %v3728_v15  ;;  %259 = vmatpush1.bf16.msra.mxu1 %v3729_v16 }
  0x38   :  { %156 = vmatprep.subr.bf16.mxu0 %v3730_v17  ;;  %260 = vmatprep.subr.bf16.mxu1 %v3732_v18 }
  0x3b   :  { %157 = vmatpush1.bf16.msra.mxu0 %v3734_v19  ;;  %261 = vmatpush1.bf16.msra.mxu1 %v3735_v20 }
  0x3c   :  { %306 = vmatprep.subr.bf16.mxu0 %v3706_v1  ;;  %349 = vmatprep.subr.bf16.mxu1 %v3708_v2 }
  0x3e   :  { %3303 = vmatmul.mubr.msk.bf16.vlgmr.msra.gmra.mrb[0].mxu0 %vm144_vm0, %v3736_v21  ;;  %3324 = vmatmul.mubr.msk.bf16.vlgmr.msra.gmra.mrb[0].mxu1 %vm144_vm0, %v3736_v21 }
  0x3f   :  { %307 = vmatpush1.bf16.msra.mxu0 %v3710_v3  ;;  %350 = vmatpush1.bf16.msra.mxu1 %v3711_v4 }
  0x40   :  { %308 = vmatprep.subr.bf16.mxu0 %v3712_v5  ;;  %351 = vmatprep.subr.bf16.mxu1 %v3714_v6 }
  0x41   :  { %338 = vmatprep.mubr.bf16.mxu0 %v4272_v0  ;;  %381 = vmatprep.mubr.bf16.mxu1 %v4272_v0 }
  0x43   :  { %309 = vmatpush1.bf16.msra.mxu0 %v3716_v7  ;;  %352 = vmatpush1.bf16.msra.mxu1 %v3717_v8 }
  0x44   :  { %310 = vmatprep.subr.bf16.mxu0 %v3718_v9  ;;  %353 = vmatprep.subr.bf16.mxu1 %v3720_v10 }
  0x47   :  { %311 = vmatpush1.bf16.msra.mxu0 %v3722_v11  ;;  %354 = vmatpush1.bf16.msra.mxu1 %v3723_v12 }
  0x48   :  { %312 = vmatprep.subr.bf16.mxu0 %v3724_v13  ;;  %355 = vmatprep.subr.bf16.mxu1 %v3726_v14 }
  0x4b   :  { %313 = vmatpush1.bf16.msra.mxu0 %v3728_v15  ;;  %356 = vmatpush1.bf16.msra.mxu1 %v3729_v16 }
  0x4c   :  { %314 = vmatprep.subr.bf16.mxu0 %v3730_v17  ;;  %357 = vmatprep.subr.bf16.mxu1 %v3732_v18 }
  0x4f   :  { %315 = vmatpush1.bf16.msra.mxu0 %v3734_v19  ;;  %358 = vmatpush1.bf16.msra.mxu1 %v3735_v20 }
  0x52   :  { %3328 = vmatmul.mubr.msk.bf16.vlgmr.msra.gmra.mrb[4].mxu0 %vm144_vm0, %v3737_v22  ;;  %3329 = vmatmul.mubr.msk.bf16.vlgmr.msra.gmra.mrb[4].mxu1 %vm144_vm0, %v3737_v22 }
 0x111   :  { %v4454_v23 = vpop.f32.mrb[0].mxu0  ;;  %v4456_v24 = vpop.f32.mrb[0].mxu1 }
 0x112   :  { %v4458_v25 = vpop.f32.mrb[1].mxu0  ;;  %v4460_v26 = vpop.f32.mrb[1].mxu1 }
 0x113   :  { %v420_v27 = vsel %vm401_vm1, %v4460_v26, 0.0  ;;  %v4464_v28 = vpop.f32.mrb[2].mxu0  ;;  %v4466_v29 = vpop.f32.mrb[2].mxu1  ;;  %v402_v30 = vsel %vm401_vm1, %v4458_v25, 0.0 }
 0x114   :  { %v393_v31 = vsel %vm392_vm2, %v4464_v28, 0.0  ;;  %v412_v32 = vsel %vm392_vm2, %v4466_v29, 0.0  ;;  %v4474_v33 = vpop.f32.mrb[3].mxu0  ;;  %v4476_v34 = vpop.f32.mrb[3].mxu1 }
 0x115   :  { %v394_v35 = vadd.f32 %v393_v31, %v4454_v23  ;;  %v413_v36 = vadd.f32 %v412_v32, %v4456_v24  ;;  %v404_v37 = vsel %vm403_vm3, %v4474_v33, 0.0  ;;  %v421_v38 = vsel %vm403_vm3, %v4476_v34, 0.0 }
 0x116   :  { %v405_v39 = vadd.f32 %v404_v37, %v402_v30  ;;  %v422_v40 = vadd.f32 %v421_v38, %v420_v27 }
 0x117   :  { %v395_v41 = vrot.slane %v394_v35, 4  ;;  %v414_v42 = vrot.slane %v413_v36, 4 }
 0x118   :  { %v406_v43 = vrot.slane %v405_v39, 4  ;;  %v423_v44 = vrot.slane %v422_v40, 4 }
 0x119   :  { %v396_v45 = vadd.f32 %v395_v41, %v394_v35  ;;  %v415_v46 = vadd.f32 %v414_v42, %v413_v36 }
 0x11a   :  { %v407_v47 = vadd.f32 %v406_v43, %v405_v39  ;;  %v424_v48 = vadd.f32 %v423_v44, %v422_v40 }
 0x11b   :  { %v397_v49 = vrot.slane %v396_v45, 2  ;;  %v416_v50 = vrot.slane %v415_v46, 2 }
 0x11c   :  { %v408_v51 = vrot.slane %v407_v47, 2  ;;  %v425_v52 = vrot.slane %v424_v48, 2 }
 0x11d   :  { %v398_v53 = vadd.f32 %v397_v49, %v396_v45  ;;  %v417_v54 = vadd.f32 %v416_v50, %v415_v46 }
 0x11e   :  { %v409_v55 = vadd.f32 %v408_v51, %v407_v47  ;;  %v426_v56 = vadd.f32 %v425_v52, %v424_v48 }
 0x11f   :  { %v399_v57 = vrot.slane %v398_v53, 1  ;;  %v418_v58 = vrot.slane %v417_v54, 1 }
 0x120   :  { %v410_v59 = vrot.slane %v409_v55, 1  ;;  %v427_v60 = vrot.slane %v426_v56, 1 }
 0x121   :  { %v400_v61 = vadd.f32 %v399_v57, %v398_v53  ;;  %v419_v62 = vadd.f32 %v418_v58, %v417_v54 }
 0x122   :  { %v411_v63 = vadd.f32 %v410_v59, %v409_v55  ;;  %v428_v1 = vadd.f32 %v427_v60, %v426_v56 }
 0x123   :  { %v429_v2 = vadd.f32 %v419_v62, %v400_v61 }
 0x124   :  { %v430_v3 = vadd.f32 %v428_v1, %v411_v63 }
 0x125   :  { %v4484_v4 = vpop.f32.mrb[4].mxu0  ;;  %v4486_v5 = vpop.f32.mrb[4].mxu1 }
 0x126   :  { %v4488_v6 = vpop.f32.mrb[5].mxu0  ;;  %v4490_v7 = vpop.f32.mrb[5].mxu1 }
 0x127   :  { %v458_v8 = vsel %vm401_vm1, %v4490_v7, 0.0  ;;  %v4494_v9 = vpop.f32.mrb[6].mxu0  ;;  %v4496_v10 = vpop.f32.mrb[6].mxu1  ;;  %v439_v11 = vsel %vm401_vm1, %v4488_v6, 0.0 }
 0x128   :  { %v431_v12 = vsel %vm392_vm2, %v4494_v9, 0.0  ;;  %v450_v13 = vsel %vm392_vm2, %v4496_v10, 0.0  ;;  %v4504_v14 = vpop.f32.mrb[7].mxu0  ;;  %v4506_v15 = vpop.f32.mrb[7].mxu1 }
 0x129   :  { %v432_v16 = vadd.f32 %v431_v12, %v4484_v4  ;;  %v451_v17 = vadd.f32 %v450_v13, %v4486_v5  ;;  %v440_v18 = vsel %vm403_vm3, %v4504_v14, 0.0  ;;  %v459_v19 = vsel %vm403_vm3, %v4506_v15, 0.0 }
 0x12a   :  { %v441_v20 = vadd.f32 %v440_v18, %v439_v11  ;;  %v460_v21 = vadd.f32 %v459_v19, %v458_v8  ;;  %v505_v11 = vlaneseq }
 0x12b   :  { %v433_v22 = vrot.slane %v432_v16, 4  ;;  %v452_v27 = vrot.slane %v451_v17, 4 }
 0x12c   :  { %v442_v30 = vrot.slane %v441_v20, 4  ;;  %v461_v31 = vrot.slane %v460_v21, 4  ;;  %v4526_v12 = vshrl.u32 %v505_v11, 7 }
 0x12d   :  { %v434_v32 = vadd.f32 %v433_v22, %v432_v16  ;;  %v453_v35 = vadd.f32 %v452_v27, %v451_v17 }
 0x12e   :  { %v443_v36 = vadd.f32 %v442_v30, %v441_v20  ;;  %v462_v37 = vadd.f32 %v461_v31, %v460_v21  ;;  %v4529_v13 = vsub.s32 0, %v4526_v12 }
 0x12f   :  { %v435_v38 = vrot.slane %v434_v32, 2  ;;  %v454_v39 = vrot.slane %v453_v35, 2 }
 0x130   :  { %v444_v40 = vrot.slane %v443_v36, 2  ;;  %v463_v41 = vrot.slane %v462_v37, 2 }
 0x131   :  { %v436_v42 = vadd.f32 %v435_v38, %v434_v32  ;;  %v455_v43 = vadd.f32 %v454_v39, %v453_v35 }
 0x132   :  { %v445_v44 = vadd.f32 %v444_v40, %v443_v36  ;;  %v464_v45 = vadd.f32 %v463_v41, %v462_v37 }
 0x133   :  { %v437_v46 = vrot.slane %v436_v42, 1  ;;  %v456_v47 = vrot.slane %v455_v43, 1 }
 0x134   :  { %v446_v48 = vrot.slane %v445_v44, 1  ;;  %v465_v49 = vrot.slane %v464_v45, 1 }
 0x135   :  { %v438_v50 = vadd.f32 %v437_v46, %v436_v42  ;;  %v457_v53 = vadd.f32 %v456_v47, %v455_v43 }
 0x136   :  { %v447_v51 = vadd.f32 %v446_v48, %v445_v44  ;;  %v466_v55 = vadd.f32 %v465_v49, %v464_v45 }
 0x137   :  { %v448_v52 = vadd.f32 %v438_v50, %v429_v2 }
 0x138   :  { %v449_v54 = vadd.f32 %v447_v51, %v430_v3 }
 0x139   :  { %v467_v56 = vadd.f32 %v457_v53, %v448_v52 }
 0x13a   :  { %v468_v57 = vadd.f32 %v466_v55, %v449_v54 }
 0x13b   :  { %478 = vrot.lane.b32.xlu1 %v467_v56, %s4273_s0  ;;  %470 = vrot.lane.b32.xlu0 %v467_v56, %s4274_s18 }
 0x13f   :  { %474 = vrot.lane.b32.xlu0 %v467_v56, %s4267_s23  ;;  %484 = vrot.lane.b32.xlu1 %v468_v57, %s4274_s18 }
 0x1ad   :  { %v471_v58 = vpop.permute.xlu0 %470  ;;  %v479_v60 = vpop.permute.xlu1 %478 }
 0x1ae   :  { %v473_v59 = vadd.f32 %v471_v58, %v467_v56 }
 0x1b1   :  { %v475_v61 = vpop.permute.xlu0 %474  ;;  %v485_v2 = vpop.permute.xlu1 %484 }
 0x1b2   :  { %v477_v62 = vadd.f32 %v475_v61, %v473_v59 }
 0x1b4   :  { %v481_v63 = vadd.f32 %v479_v60, %v477_v62 }
 0x1b6   :  { %v482_v1 = vadd.f32 %v481_v63, %v468_v57 }
 0x1b8   :  { %v487_v3 = vadd.f32 %v485_v2, %v482_v1 }
 0x1ba   :  { %v4518_v8 = vmul.f32 0.0034722222, %v487_v3 }
 0x1bc   :  { %494 = vrot.lane.b32.xlu1 %v4518_v8, %s4267_s23  ;;  %491 = vrot.lane.b32.xlu0 %v4518_v8, %s4273_s0 }
 0x1c0   :  { %497 = vrot.lane.b32.xlu0 %v4518_v8, %s4274_s18 }
 0x22e   :  { %v495_v16 = vpop.permute.xlu1 %494  ;;  %v492_v17 = vpop.permute.xlu0 %491 }
 0x22f   :  { %v501_v18 = vsel %vm500_vm4, %v4518_v8, %v492_v17 }
 0x230   :  { %v512_v19 = vrot.slane %v501_v18, %v4529_v13  ;;  %v502_v20 = vsel %vm401_vm1, %v501_v18, %v495_v16 }
 0x232   :  { %v498_v21 = vpop.permute.xlu0 %497  ;;  %v514_v22 = vsub.f32 %v4458_v25, %v512_v19  ;;  %v516_v27 = vsub.f32 %v4474_v33, %v512_v19  ;;  %v539_v30 = vsub.f32 %v4460_v26, %v512_v19  ;;  %v541_v31 = vsub.f32 %v4476_v34, %v512_v19 }
 0x233   :  { %v504_v32 = vsel %vm503_vm5, %v502_v20, %v498_v21  ;;  %v566_v35 = vsub.f32 %v4488_v6, %v512_v19  ;;  %v568_v36 = vsub.f32 %v4504_v14, %v512_v19  ;;  %v593_v37 = vsub.f32 %v4490_v7, %v512_v19 }
 0x234   :  { %v508_v38 = vrot.slane %v504_v32, %v4529_v13  ;;  %v518_v39 = vmul.f32 %v514_v22, %v514_v22  ;;  %v520_v40 = vmul.f32 %v516_v27, %v516_v27  ;;  %v543_v41 = vmul.f32 %v539_v30, %v539_v30 }
 0x235   :  { %v545_v42 = vmul.f32 %v541_v31, %v541_v31  ;;  %v570_v43 = vmul.f32 %v566_v35, %v566_v35  ;;  %v572_v44 = vmul.f32 %v568_v36, %v568_v36  ;;  %v595_v45 = vsub.f32 %v4506_v15, %v512_v19 }
 0x236   :  { %v513_v46 = vsub.f32 %v4454_v23, %v508_v38  ;;  %v515_v47 = vsub.f32 %v4464_v28, %v508_v38  ;;  %v538_v48 = vsub.f32 %v4456_v24, %v508_v38  ;;  %v540_v49 = vsub.f32 %v4466_v29, %v508_v38 }
 0x237   :  { %v565_v50 = vsub.f32 %v4484_v4, %v508_v38  ;;  %v567_v51 = vsub.f32 %v4494_v9, %v508_v38  ;;  %v592_v52 = vsub.f32 %v4486_v5, %v508_v38  ;;  %v594_v53 = vsub.f32 %v4496_v10, %v508_v38 }
 0x238   :  { %v517_v54 = vmul.f32 %v513_v46, %v513_v46  ;;  %v519_v55 = vmul.f32 %v515_v47, %v515_v47  ;;  %v542_v56 = vmul.f32 %v538_v48, %v538_v48  ;;  %v544_v57 = vmul.f32 %v540_v49, %v540_v49 }
 0x239   :  { %v569_v58 = vmul.f32 %v565_v50, %v565_v50  ;;  %v571_v59 = vmul.f32 %v567_v51, %v567_v51  ;;  %v596_v60 = vmul.f32 %v592_v52, %v592_v52  ;;  %v598_v61 = vmul.f32 %v594_v53, %v594_v53 }
 0x23a   :  { %v521_v62 = vsel %vm392_vm2, %v519_v55, 0.0  ;;  %v546_v63 = vsel %vm392_vm2, %v544_v57, 0.0  ;;  %v529_v1 = vsel %vm401_vm1, %v518_v39, 0.0  ;;  %v530_v2 = vsel %vm403_vm3, %v520_v40, 0.0 }
 0x23b   :  { %v522_v3 = vadd.f32 %v521_v62, %v517_v54  ;;  %v547_v11 = vadd.f32 %v546_v63, %v542_v56  ;;  %v573_v16 = vsel %vm392_vm2, %v571_v59, 0.0  ;;  %v600_v17 = vsel %vm392_vm2, %v598_v61, 0.0 }
 0x23c   :  { %v574_v18 = vadd.f32 %v573_v16, %v569_v58  ;;  %v601_v19 = vadd.f32 %v600_v17, %v596_v60  ;;  %v531_v20 = vadd.f32 %v530_v2, %v529_v1  ;;  %v554_v21 = vsel %vm401_vm1, %v543_v41, 0.0 }
 0x23d   :  { %v523_v22 = vrot.slane %v522_v3, 4  ;;  %v548_v27 = vrot.slane %v547_v11, 4  ;;  %v555_v30 = vsel %vm403_vm3, %v545_v42, 0.0  ;;  %v581_v31 = vsel %vm401_vm1, %v570_v43, 0.0 }
 0x23e   :  { %v575_v32 = vrot.slane %v574_v18, 4  ;;  %v602_v35 = vrot.slane %v601_v19, 4  ;;  %v532_v36 = vrot.slane %v531_v20, 4  ;;  %v556_v38 = vadd.f32 %v555_v30, %v554_v21 }
 0x23f   :  { %v524_v39 = vadd.f32 %v523_v22, %v522_v3  ;;  %v549_v40 = vadd.f32 %v548_v27, %v547_v11  ;;  %v582_v46 = vsel %vm403_vm3, %v572_v44, 0.0  ;;  %v597_v47 = vmul.f32 %v593_v37, %v593_v37 }
 0x240   :  { %v576_v48 = vadd.f32 %v575_v32, %v574_v18  ;;  %v603_v49 = vadd.f32 %v602_v35, %v601_v19  ;;  %v533_v50 = vadd.f32 %v532_v36, %v531_v20  ;;  %v557_v51 = vrot.slane %v556_v38, 4 }
 0x241   :  { %v525_v41 = vrot.slane %v524_v39, 2  ;;  %v550_v52 = vrot.slane %v549_v40, 2  ;;  %v583_v53 = vadd.f32 %v582_v46, %v581_v31  ;;  %v599_v54 = vmul.f32 %v595_v45, %v595_v45 }
 0x242   :  { %v577_v42 = vrot.slane %v576_v48, 2  ;;  %v604_v55 = vrot.slane %v603_v49, 2  ;;  %v534_v43 = vrot.slane %v533_v50, 2  ;;  %v558_v56 = vadd.f32 %v557_v51, %v556_v38 }
 0x243   :  { %v526_v57 = vadd.f32 %v525_v41, %v524_v39  ;;  %v551_v58 = vadd.f32 %v550_v52, %v549_v40  ;;  %v584_v59 = vrot.slane %v583_v53, 4  ;;  %v608_v60 = vsel %vm401_vm1, %v597_v47, 0.0 }
 0x244   :  { %v578_v61 = vadd.f32 %v577_v42, %v576_v48  ;;  %v605_v44 = vadd.f32 %v604_v55, %v603_v49  ;;  %v535_v37 = vadd.f32 %v534_v43, %v533_v50  ;;  %v559_v62 = vrot.slane %v558_v56, 2 }
 0x245   :  { %v527_v63 = vrot.slane %v526_v57, 1  ;;  %v552_v1 = vrot.slane %v551_v58, 1  ;;  %v585_v2 = vadd.f32 %v584_v59, %v583_v53  ;;  %v609_v3 = vsel %vm403_vm3, %v599_v54, 0.0 }
 0x246   :  { %v579_v11 = vrot.slane %v578_v61, 1  ;;  %v606_v45 = vrot.slane %v605_v44, 1  ;;  %v536_v16 = vrot.slane %v535_v37, 1  ;;  %v560_v17 = vadd.f32 %v559_v62, %v558_v56  ;;  %v641_v62 = vld [vmem:[%s4969_s2] sm:$0x1] }
 0x247   :  { %v528_v18 = vadd.f32 %v527_v63, %v526_v57  ;;  %v553_v19 = vadd.f32 %v552_v1, %v551_v58  ;;  %v586_v20 = vrot.slane %v585_v2, 2  ;;  %v610_v21 = vadd.f32 %v609_v3, %v608_v60 }
 0x248   :  { %v537_v22 = vadd.f32 %v536_v16, %v535_v37  ;;  %v561_v27 = vrot.slane %v560_v17, 1  ;;  %v580_v31 = vadd.f32 %v579_v11, %v578_v61  ;;  %v607_v39 = vadd.f32 %v606_v45, %v605_v44  ;;  %v3738_v16 = vld [vmem:[#allocation2 + $0xc0] sm:$0xff]  }
 0x249   :  { %v563_v30 = vadd.f32 %v553_v19, %v528_v18  ;;  %v587_v32 = vadd.f32 %v586_v20, %v585_v2  ;;  %v611_v35 = vrot.slane %v610_v21, 4  ;;  %v643_v2 = vld [vmem:[%s4970_s3] sm:$0x1]  ;;  %v3742_v20 = vld [vmem:[#allocation2 + $0xc8] sm:$0xff]   ;;  %3617 = vmatprep.subr.bf16.mxu1 %v3738_v16 }
 0x24a   :  { %v562_v36 = vadd.f32 %v561_v27, %v560_v17  ;;  %v3739_v17 = vld [vmem:[#allocation2 + $0x40] sm:$0xff]   ;;  %v3746_v27 = vld [vmem:[#allocation2 + $0xd0] sm:$0xff]  }
 0x24b   :  { %v590_v38 = vadd.f32 %v580_v31, %v563_v30  ;;  %v588_v40 = vrot.slane %v587_v32, 1  ;;  %v612_v46 = vadd.f32 %v611_v35, %v610_v21  ;;  %v3740_v18 = vld [vmem:[#allocation2 + $0x80] sm:$0xff]   ;;  %3595 = vmatprep.subr.bf16.mxu0 %v3739_v17  ;;  %v3744_v21 = vld [vmem:[#allocation2 + $0x88] sm:$0xff]   ;;  %v3747_v30 = vld [vmem:[#allocation2 + $0x50] sm:$0xff]  }
 0x24c   :  { %v564_v47 = vadd.f32 %v562_v36, %v537_v22  ;;  %v3741_v19 = vld [vmem:[#allocation2] sm:$0xff]   ;;  %3618 = vmatpush3.bf16.msra.mxu1 %v3740_v18  ;;  %v3745_v22 = vld [vmem:[#allocation2 + $0x8] sm:$0xff]   ;;  %v3748_v31 = vld [vmem:[#allocation2 + $0x90] sm:$0xff]  }
 0x24d   :  { %v617_v48 = vadd.f32 %v607_v39, %v590_v38  ;;  %v589_v49 = vadd.f32 %v588_v40, %v587_v32  ;;  %v613_v50 = vrot.slane %v612_v46, 2  ;;  %3596 = vmatpush3.bf16.msra.mxu0 %v3741_v19  ;;  %3619 = vmatprep.subr.bf16.mxu1 %v3742_v20  ;;  %v3749_v32 = vld [vmem:[#allocation2 + $0x10] sm:$0xff]   ;;  %v3750_v35 = vld [vmem:[#allocation2 + $0xd8] sm:$0xff]   ;;  %v3754_v40 = vld [vmem:[#allocation2 + $0xe0] sm:$0xff]  }
 0x24e   :  { %v3751_v36 = vld [vmem:[#allocation2 + $0x58] sm:$0xff]  }
 0x24f   :  { %624 = vrot.lane.b32.xlu0 %v617_v48, %s4267_s23  ;;  %620 = vrot.lane.b32.xlu1 %v617_v48, %s4274_s18  ;;  %v591_v51 = vadd.f32 %v589_v49, %v564_v47  ;;  %v614_v41 = vadd.f32 %v613_v50, %v612_v46  ;;  %v3752_v38 = vld [vmem:[#allocation2 + $0x98] sm:$0xff]   ;;  %v3755_v46 = vld [vmem:[#allocation2 + $0x60] sm:$0xff]   ;;  %v3758_v49 = vld [vmem:[#allocation2 + $0xe8] sm:$0xff]  }
 0x250   :  { %3620 = vmatpush3.bf16.msra.mxu1 %v3744_v21  ;;  %v3753_v39 = vld [vmem:[#allocation2 + $0x18] sm:$0xff]   ;;  %v3756_v47 = vld [vmem:[#allocation2 + $0xa0] sm:$0xff]   ;;  %v3759_v50 = vld [vmem:[#allocation2 + $0x68] sm:$0xff]  }
 0x251   :  { %v615_v52 = vrot.slane %v614_v41, 1  ;;  %3621 = vmatprep.subr.bf16.mxu1 %v3746_v27 }
 0x253   :  { %v616_v53 = vadd.f32 %v615_v52, %v614_v41  ;;  %628 = vrot.lane.b32.xlu1 %v617_v48, %s4273_s0  ;;  %v3761_v41 = vld [vmem:[#allocation2 + $0x28] sm:$0xff]   ;;  %v3762_v52 = vld [vmem:[#allocation2 + $0xf0] sm:$0xff]  }
 0x254   :  { %3622 = vmatpush3.bf16.msra.mxu1 %v3748_v31 }
 0x255   :  { %v618_v54 = vadd.f32 %v616_v53, %v591_v51  ;;  %3623 = vmatprep.subr.bf16.mxu1 %v3750_v35  ;;  %v3760_v51 = vld [vmem:[#allocation2 + $0xa8] sm:$0xff]   ;;  %v3763_v53 = vld [vmem:[#allocation2 + $0x70] sm:$0xff]  }
 0x257   :  { %634 = vrot.lane.b32.xlu0 %v618_v54, %s4274_s18 }
 0x258   :  { %3624 = vmatpush3.bf16.msra.mxu1 %v3752_v38 }
 0x259   :  { %3625 = vmatprep.subr.bf16.mxu1 %v3754_v40 }
 0x25c   :  { %3626 = vmatpush3.bf16.msra.mxu1 %v3756_v47 }
 0x25d   :  { %3627 = vmatprep.subr.bf16.mxu1 %v3758_v49 }
 0x260   :  { %3628 = vmatpush3.bf16.msra.mxu1 %v3760_v51 }
 0x261   :  { %3629 = vmatprep.subr.bf16.mxu1 %v3762_v52 }
 0x2c1   :  { %v621_v42 = vpop.permute.xlu1 %620  ;;  %v625_v43 = vpop.permute.xlu0 %624 }
 0x2c2   :  { %v623_v55 = vadd.f32 %v621_v42, %v617_v48  ;;  %v3757_v48 = vld [vmem:[#allocation2 + $0x20] sm:$0xff]   ;;  %v3765_v42 = vld [vmem:[#allocation2 + $0x30] sm:$0xff]  }
 0x2c4   :  { %v627_v56 = vadd.f32 %v625_v43, %v623_v55 }
 0x2c5   :  { %v629_v57 = vpop.permute.xlu1 %628 }
 0x2c6   :  { %v631_v58 = vadd.f32 %v629_v57, %v627_v56 }
 0x2c8   :  { %v632_v59 = vadd.f32 %v631_v58, %v618_v54  ;;  %v3764_v54 = vld [vmem:[#allocation2 + $0xb0] sm:$0xff]  }
 0x2c9   :  { %v635_v60 = vpop.permute.xlu0 %634  ;;  %3630 = vmatpush3.bf16.msra.mxu1 %v3764_v54 }
 0x2ca   :  { %v637_v61 = vadd.f32 %v635_v60, %v632_v59 }
 0x2cc   :  { %v638_v44 = vmul.f32 0.0034722222, %v637_v61 }
 0x2ce   :  { %v639_v37 = vadd.f32 1e-05, %v638_v44 }
 0x2d0   :  { %4054 = vrsqrt.f32 %v639_v37 }
 0x2da   :  { %v4055_v63 = vpop.eup %4054 }
 0x2db   :  { %v4572_v1 = vmul.f32 %v4055_v63, %v641_v62 }
 0x2dd   :  { %650 = vrot.lane.b32.xlu0 %v4572_v1, %s4267_s23  ;;  %647 = vrot.lane.b32.xlu1 %v4572_v1, %s4273_s0  ;;  %v644_v3 = vmul.f32 %v4572_v1, %v4518_v8  ;;  %v3743_v8 = vld [vmem:[#allocation2 + $0x48] sm:$0xff]  }
 0x2de   :  { %3597 = vmatprep.subr.bf16.mxu0 %v3743_v8 }
 0x2df   :  { %v4583_v11 = vsub.f32 %v643_v2, %v644_v3  ;;  %3598 = vmatpush3.bf16.msra.mxu0 %v3745_v22 }
 0x2e0   :  { %3599 = vmatprep.subr.bf16.mxu0 %v3747_v30 }
 0x2e1   :  { %653 = vrot.lane.b32.xlu1 %v4572_v1, %s4274_s18  ;;  %v663_v45 = vrot.slane %v4583_v11, %v4529_v13 }
 0x2e3   :  { %664 = vrot.lane.b32.xlu0 %v663_v45, %s4273_s0  ;;  %3600 = vmatpush3.bf16.msra.mxu0 %v3749_v32 }
 0x2e4   :  { %3601 = vmatprep.subr.bf16.mxu0 %v3751_v36 }
 0x2e5   :  { %667 = vrot.lane.b32.xlu1 %v663_v45, %s4267_s23 }
 0x2e7   :  { %670 = vrot.lane.b32.xlu0 %v663_v45, %s4274_s18  ;;  %3602 = vmatpush3.bf16.msra.mxu0 %v3753_v39 }
 0x2e8   :  { %3603 = vmatprep.subr.bf16.mxu0 %v3755_v46 }
 0x2eb   :  { %3604 = vmatpush3.bf16.msra.mxu0 %v3757_v48 }
 0x2ec   :  { %3605 = vmatprep.subr.bf16.mxu0 %v3759_v50 }
 0x2ef   :  { %3606 = vmatpush3.bf16.msra.mxu0 %v3761_v41 }
 0x2f0   :  { %3607 = vmatprep.subr.bf16.mxu0 %v3763_v53 }
 0x2f3   :  { %3608 = vmatpush3.bf16.msra.mxu0 %v3765_v42 }
 0x34f   :  { %v648_v55 = vpop.permute.xlu1 %647  ;;  %v651_v43 = vpop.permute.xlu0 %650 }
 0x350   :  { %v656_v56 = vsel %vm500_vm4, %v4572_v1, %v648_v55 }
 0x351   :  { %v4595_v57 = vrot.slane %v656_v56, %v4529_v13  ;;  %v657_v58 = vsel %vm401_vm1, %v656_v56, %v651_v43 }
 0x353   :  { %v654_v59 = vpop.permute.xlu1 %653  ;;  %v685_v37 = vmul.f32 %v4595_v57, %v4458_v25  ;;  %v729_v62 = vmul.f32 %v4595_v57, %v4460_v26  ;;  %v687_v3 = vmul.f32 %v4595_v57, %v4474_v33  ;;  %v731_v45 = vmul.f32 %v4595_v57, %v4476_v34 }
 0x354   :  { %v658_v60 = vsel %vm503_vm5, %v657_v58, %v654_v59  ;;  %v769_v16 = vmul.f32 %v4595_v57, %v4488_v6  ;;  %v771_v17 = vmul.f32 %v4595_v57, %v4504_v14 }
 0x355   :  { %v4600_v61 = vrot.slane %v658_v60, %v4529_v13  ;;  %v665_v44 = vpop.permute.xlu0 %664 }
 0x356   :  { %v673_v63 = vsel %vm500_vm4, %v4583_v11, %v665_v44 }
 0x357   :  { %v4609_v1 = vrot.slane %v673_v63, %v4529_v13  ;;  %v668_v2 = vpop.permute.xlu1 %667  ;;  %v684_v25 = vmul.f32 %v4600_v61, %v4454_v23  ;;  %v728_v26 = vmul.f32 %v4600_v61, %v4456_v24  ;;  %v686_v19 = vmul.f32 %v4600_v61, %v4464_v28 }
 0x358   :  { %v674_v11 = vsel %vm401_vm1, %v673_v63, %v668_v2  ;;  %v730_v14 = vmul.f32 %v4600_v61, %v4466_v29  ;;  %v768_v20 = vmul.f32 %v4600_v61, %v4484_v4  ;;  %v770_v28 = vmul.f32 %v4600_v61, %v4494_v9 }
 0x359   :  { %v671_v18 = vpop.permute.xlu0 %670  ;;  %v4625_v33 = vadd.f32 %v4609_v1, %v685_v37  ;;  %v4628_v34 = vadd.f32 %v4609_v1, %v687_v3  ;;  %v4631_v6 = vadd.f32 %v729_v62, %v4609_v1  ;;  %v4634_v23 = vadd.f32 %v731_v45, %v4609_v1 }
 0x35a   :  { %v675_v24 = vsel %vm503_vm5, %v674_v11, %v671_v18  ;;  %v4653_v31 = vadd.f32 %v769_v16, %v4609_v1  ;;  %v808_v29 = vmul.f32 %v4600_v61, %v4486_v5  ;;  %v4680_v47 = vadd.f32 %v771_v17, %v4609_v1 }
 0x35b   :  { %v4644_v8 = vrot.slane %v675_v24, %v4529_v13  ;;  %v3331_v21 = vmul.f32 -1.442695, %v4625_v33  ;;  %v3333_v22 = vmul.f32 -1.442695, %v4628_v34  ;;  %v3335_v27 = vmul.f32 -1.442695, %v4631_v6 }
 0x35c   :  { %v3337_v30 = vmul.f32 -1.442695, %v4634_v23  ;;  %v3339_v50 = vmul.f32 -1.442695, %v4653_v31  ;;  %v3341_v41 = vmul.f32 -1.442695, %v4680_v47  ;;  %v809_v62 = vmul.f32 %v4595_v57, %v4490_v7 }
 0x35d   :  { %v4658_v4 = vadd.f32 %v4644_v8, %v684_v25  ;;  %v4661_v32 = vadd.f32 %v4644_v8, %v686_v19  ;;  %4056 = vpow2.f32 %v3331_v21  ;;  %v4664_v35 = vadd.f32 %v728_v26, %v4644_v8 }
 0x35e   :  { %4058 = vpow2.f32 %v3333_v22  ;;  %v4667_v36 = vadd.f32 %v730_v14, %v4644_v8  ;;  %v4670_v9 = vadd.f32 %v768_v20, %v4644_v8  ;;  %v4673_v38 = vadd.f32 %v770_v28, %v4644_v8 }
 0x35f   :  { %v3330_v5 = vmul.f32 -1.442695, %v4658_v4  ;;  %v3332_v39 = vmul.f32 -1.442695, %v4661_v32  ;;  %v3334_v40 = vmul.f32 -1.442695, %v4664_v35  ;;  %4060 = vpow2.f32 %v3335_v27 }
 0x360   :  { %v3336_v46 = vmul.f32 -1.442695, %v4667_v36  ;;  %4062 = vpow2.f32 %v3337_v30  ;;  %v3338_v48 = vmul.f32 -1.442695, %v4670_v9  ;;  %v4684_v49 = vadd.f32 %v808_v29, %v4644_v8 }
 0x361   :  { %4064 = vpow2.f32 %v3330_v5  ;;  %v3340_v51 = vmul.f32 -1.442695, %v4673_v38  ;;  %v810_v3 = vmul.f32 %v4600_v61, %v4496_v10  ;;  %v811_v25 = vmul.f32 %v4595_v57, %v4506_v15 }
 0x362   :  { %4066 = vpow2.f32 %v3332_v39  ;;  %v3342_v52 = vmul.f32 -1.442695, %v4684_v49  ;;  %v4697_v26 = vadd.f32 %v809_v62, %v4609_v1 }
 0x363   :  { %4068 = vpow2.f32 %v3334_v40  ;;  %v4700_v7 = vadd.f32 %v810_v3, %v4644_v8  ;;  %v4703_v10 = vadd.f32 %v811_v25, %v4609_v1 }
 0x364   :  { %4070 = vpow2.f32 %v3336_v46  ;;  %v3343_v57 = vmul.f32 -1.442695, %v4697_v26 }
 0x365   :  { %4072 = vpow2.f32 %v3338_v48  ;;  %v3344_v8 = vmul.f32 -1.442695, %v4700_v7  ;;  %v3345_v27 = vmul.f32 -1.442695, %v4703_v10 }
 0x366   :  { %4074 = vpow2.f32 %v3339_v50 }
 0x367   :  { %v4057_v53 = vpop.eup %4056  ;;  %4076 = vpow2.f32 %v3340_v51 }
 0x368   :  { %v4059_v54 = vpop.eup %4058  ;;  %v713_v42 = vadd.f32 1.0, %v4057_v53  ;;  %4078 = vpow2.f32 %v3341_v41 }
 0x369   :  { %v4061_v55 = vpop.eup %4060  ;;  %v715_v43 = vadd.f32 1.0, %v4059_v54  ;;  %4080 = vpow2.f32 %v3342_v52 }
 0x36a   :  { %v4063_v56 = vpop.eup %4062  ;;  %4082 = vrcp.f32 %v713_v42  ;;  %v749_v58 = vadd.f32 1.0, %v4061_v55 }
 0x36b   :  { %v4065_v59 = vpop.eup %4064  ;;  %4084 = vrcp.f32 %v715_v43  ;;  %v751_v60 = vadd.f32 1.0, %v4063_v56 }
 0x36c   :  { %v4067_v44 = vpop.eup %4066  ;;  %v712_v37 = vadd.f32 1.0, %v4065_v59  ;;  %4086 = vrcp.f32 %v749_v58 }
 0x36d   :  { %v4069_v63 = vpop.eup %4068  ;;  %v714_v2 = vadd.f32 1.0, %v4067_v44  ;;  %4088 = vrcp.f32 %v751_v60 }
 0x36e   :  { %v4071_v45 = vpop.eup %4070  ;;  %4090 = vrcp.f32 %v712_v37  ;;  %v748_v16 = vadd.f32 1.0, %v4069_v63 }
 0x36f   :  { %v4073_v11 = vpop.eup %4072  ;;  %4092 = vrcp.f32 %v714_v2  ;;  %v750_v17 = vadd.f32 1.0, %v4071_v45 }
 0x370   :  { %v4075_v18 = vpop.eup %4074  ;;  %4094 = vrcp.f32 %v748_v16  ;;  %v788_v24 = vadd.f32 1.0, %v4073_v11 }
 0x371   :  { %v4077_v61 = vpop.eup %4076  ;;  %4096 = vrcp.f32 %v750_v17  ;;  %v789_v19 = vadd.f32 1.0, %v4075_v18 }
 0x372   :  { %v4079_v14 = vpop.eup %4078  ;;  %v790_v15 = vadd.f32 1.0, %v4077_v61  ;;  %4098 = vrcp.f32 %v788_v24 }
 0x373   :  { %v4081_v20 = vpop.eup %4080  ;;  %v791_v21 = vadd.f32 1.0, %v4079_v14  ;;  %4100 = vrcp.f32 %v789_v19 }
 0x374   :  { %v4083_v22 = vpop.eup %4082  ;;  %4102 = vrcp.f32 %v790_v15  ;;  %v828_v28 = vadd.f32 1.0, %v4081_v20  ;;  %v3767_v15 = vld [vmem:[#allocation2 + $0x78] sm:$0xff]  }
 0x375   :  { %v4085_v30 = vpop.eup %4084  ;;  %v725_v1 = vmul.f32 %v4083_v22, %v4625_v33  ;;  %4104 = vrcp.f32 %v791_v21  ;;  %3609 = vmatprep.subr.bf16.mxu0 %v3767_v15  ;;  %v3783_v15 = vld [vmem:[#allocation2 + $0x1a0] sm:$0xff]  }
 0x376   :  { %v4087_v29 = vpop.eup %4086  ;;  %v727_v5 = vmul.f32 %v4085_v30, %v4628_v34  ;;  %4106 = vpow2.f32 %v3343_v57  ;;  %v3768_v57 = vld [vmem:[#allocation2 + $0xb8] sm:$0xff]  }
 0x377   :  { %v4089_v39 = vpop.eup %4088  ;;  %v761_v40 = vmul.f32 %v4087_v29, %v4631_v6  ;;  %4108 = vpow2.f32 %v3344_v8  ;;  %v3769_v8 = vld [vmem:[#allocation2 + $0x38] sm:$0xff]  }
 0x378   :  { %v4091_v46 = vpop.eup %4090  ;;  %v763_v48 = vmul.f32 %v4089_v39, %v4634_v23  ;;  %4110 = vpow2.f32 %v3345_v27  ;;  %3610 = vmatpush3.bf16.msra.mxu0 %v3769_v8  ;;  %v3788_v8 = vld [vmem:[#allocation2 + $0x170] sm:$0xff]  }
 0x379   :  { %v4093_v50 = vpop.eup %4092  ;;  %v724_v51 = vmul.f32 %v4091_v46, %v4658_v4  ;;  %v765_v41 = vmax.f32 %v725_v1, %v761_v40  ;;  %4112 = vrcp.f32 %v828_v28  ;;  %v3770_v1 = vld [vmem:[#allocation2 + $0x140] sm:$0xff]  }
 0x37a   :  { %v4095_v33 = vpop.eup %4094  ;;  %v726_v52 = vmul.f32 %v4093_v50, %v4661_v32  ;;  %v767_v53 = vmax.f32 %v727_v5, %v763_v48  ;;  %3639 = vmatprep.subr.bf16.mxu0 %v3770_v1 }
 0x37b   :  { %v4097_v54 = vpop.eup %4096  ;;  %v760_v34 = vmul.f32 %v4095_v33, %v4664_v35 }
 0x37c   :  { %v4099_v42 = vpop.eup %4098  ;;  %v762_v6 = vmul.f32 %v4097_v54, %v4667_v36 }
 0x37d   :  { %v4101_v55 = vpop.eup %4100  ;;  %v764_v43 = vmax.f32 %v724_v51, %v760_v34  ;;  %v800_v23 = vmul.f32 %v4099_v42, %v4670_v9 }
 0x37e   :  { %v4103_v56 = vpop.eup %4102  ;;  %v766_v58 = vmax.f32 %v726_v52, %v762_v6  ;;  %v801_v4 = vmul.f32 %v4101_v55, %v4653_v31 }
 0x37f   :  { %v4105_v59 = vpop.eup %4104  ;;  %v802_v60 = vmul.f32 %v4103_v56, %v4673_v38  ;;  %v804_v44 = vmax.f32 %v764_v43, %v800_v23 }
 0x380   :  { %v4107_v32 = vpop.eup %4106  ;;  %v803_v37 = vmul.f32 %v4105_v59, %v4680_v47  ;;  %v805_v62 = vmax.f32 %v765_v41, %v801_v4 }
 0x381   :  { %v4109_v35 = vpop.eup %4108  ;;  %v806_v63 = vmax.f32 %v766_v58, %v802_v60  ;;  %v829_v2 = vadd.f32 1.0, %v4107_v32 }
 0x382   :  { %v4111_v36 = vpop.eup %4110  ;;  %v807_v3 = vmax.f32 %v767_v53, %v803_v37  ;;  %v830_v45 = vadd.f32 1.0, %v4109_v35 }
 0x383   :  { %v4113_v16 = vpop.eup %4112  ;;  %v831_v9 = vadd.f32 1.0, %v4111_v36  ;;  %4114 = vrcp.f32 %v829_v2  ;;  %v3771_v2 = vld [vmem:[#allocation2 + $0x180] sm:$0xff]  }
 0x384   :  { %4116 = vrcp.f32 %v830_v45  ;;  %v840_v31 = vmul.f32 %v4113_v16, %v4684_v49  ;;  %v3766_v49 = vld [vmem:[#allocation2 + $0xf8] sm:$0xff]   ;;  %v3772_v45 = vld [vmem:[#allocation2 + $0x100] sm:$0xff]  }
 0x385   :  { %4118 = vrcp.f32 %v831_v9  ;;  %3631 = vmatprep.subr.bf16.mxu1 %v3766_v49  ;;  %v3782_v49 = vld [vmem:[#allocation2 + $0x160] sm:$0xff]  }
 0x386   :  { %v4721_v25 = vmax.f32 %v804_v44, %v840_v31  ;;  %3632 = vmatpush3.bf16.msra.mxu1 %v3768_v57  ;;  %v3784_v57 = vld [vmem:[#allocation2 + $0x120] sm:$0xff]  }
 0x387   :  { %1527 = vmatprep.subr.bf16.mxu1 %v4272_v0 }
 0x388   :  { %v884_v19 = vrot.slane %v4721_v25, 3  ;;  %v874_v14 = vrot.slane %v4721_v25, 2  ;;  %v857_v21 = vrot.slane %v4721_v25, 1 }
 0x38d   :  { %v4115_v38 = vpop.eup %4114 }
 0x38e   :  { %v4117_v11 = vpop.eup %4116  ;;  %v841_v47 = vmul.f32 %v4115_v38, %v4697_v26  ;;  %v864_v26 = vrot.slane %v4721_v25, 5  ;;  %v3773_v38 = vld [vmem:[#allocation2 + $0x148] sm:$0xff]  }
 0x38f   :  { %v4119_v17 = vpop.eup %4118  ;;  %v842_v18 = vmul.f32 %v4117_v11, %v4700_v7  ;;  %v850_v7 = vrot.slane %v4721_v25, 4  ;;  %v3774_v11 = vld [vmem:[#allocation2 + $0x188] sm:$0xff]  }
 0x390   :  { %v843_v24 = vmul.f32 %v4119_v17, %v4703_v10  ;;  %v845_v61 = vmax.f32 %v805_v62, %v841_v47  ;;  %v3775_v47 = vld [vmem:[#allocation2 + $0x108] sm:$0xff]   ;;  %v3776_v17 = vld [vmem:[#allocation2 + $0x150] sm:$0xff]  }
 0x391   :  { %v846_v20 = vmax.f32 %v806_v63, %v842_v18  ;;  %v855_v62 = vsel %vm854_vm6, %v4721_v25, %v850_v7  ;;  %v3777_v18 = vld [vmem:[#allocation2 + $0x190] sm:$0xff]  }
 0x392   :  { %v847_v22 = vmax.f32 %v807_v3, %v843_v24  ;;  %v885_v27 = vrot.slane %v845_v61, 3  ;;  %v858_v30 = vrot.slane %v845_v61, 1  ;;  %v867_v10 = vrot.slane %v845_v61, 5  ;;  %v3778_v24 = vld [vmem:[#allocation2 + $0x110] sm:$0xff]  }
 0x393   :  { %v888_v28 = vrot.slane %v846_v20, 7  ;;  %v878_v29 = vrot.slane %v846_v20, 6  ;;  %v865_v5 = vrot.slane %v846_v20, 5  ;;  %v875_v39 = vrot.slane %v845_v61, 2 }
 0x394   :  { %v889_v40 = vrot.slane %v847_v22, 7  ;;  %v868_v46 = vrot.slane %v847_v22, 5  ;;  %v879_v48 = vrot.slane %v847_v22, 6  ;;  %v851_v50 = vrot.slane %v845_v61, 4 }
 0x395   :  { %v892_v51 = vsel %vm854_vm6, %v884_v19, %v888_v28  ;;  %v882_v41 = vsel %vm854_vm6, %v874_v14, %v878_v29  ;;  %v866_v33 = vsel %vm863_vm7, %v864_v26, %v865_v5  ;;  %v4736_v52 = vsel %vm854_vm6, %v850_v7, %v846_v20  ;;  %v3780_v19 = vld [vmem:[#allocation2 + $0x198] sm:$0xff]   ;;  %v3785_v20 = vld [vmem:[#allocation2 + $0x168] sm:$0xff]   ;;  %v3789_v7 = vld [vmem:[#allocation2 + $0x1b0] sm:$0xff]  }
 0x396   :  { %v893_v53 = vsel %vm854_vm6, %v885_v27, %v889_v40  ;;  %v919_v54 = vpack.c.bf16 %v882_v41, %v882_v41  ;;  %v869_v34 = vsel %vm863_vm7, %v867_v10, %v868_v46  ;;  %v872_v42 = vsel %vm854_vm6, %v857_v21, %v866_v33  ;;  %v3781_v14 = vld [vmem:[#allocation2 + $0x118] sm:$0xff]   ;;  %v3786_v21 = vld [vmem:[#allocation2 + $0x1a8] sm:$0xff]   ;;  %v3794_v28 = vld [vmem:[#allocation2 + $0x1c0] sm:$0xff]  }
 0x397   :  { %v3701_v6 = vpack.i.bf16 %v893_v53, %v892_v51  ;;  %v873_v55 = vsel %vm854_vm6, %v858_v30, %v869_v34  ;;  %v4743_v43 = vsel %vm854_vm6, %v875_v39, %v879_v48  ;;  %v895_v56 = vsel %vm854_vm6, %v851_v50, %v847_v22  ;;  %v3787_v26 = vld [vmem:[#allocation2 + $0x128] sm:$0xff]   ;;  %v3790_v22 = vld [vmem:[#allocation2 + $0x130] sm:$0xff]   ;;  %v3791_v27 = vld [vmem:[#allocation2 + $0x178] sm:$0xff]  }
 0x398   :  { %1479 = vmatprep.mubr.bf16.mxu1 %v919_v54  ;;  %v3696_v23 = vpack.i.bf16 %v873_v55, %v872_v42  ;;  %v856_v37 = vsel %vm854_vm6, %v845_v61, %v851_v50  ;;  %v916_v9 = vpack.c.bf16 %v855_v62, %v855_v62  ;;  %v923_v31 = vpack.c.bf16 %v895_v56, %v895_v56  ;;  %v3779_v61 = vld [vmem:[#allocation2 + $0x158] sm:$0xff]   ;;  %v3795_v5 = vld [vmem:[#allocation2 + $0x1c8] sm:$0xff]   ;;  %v3796_v39 = vld [vmem:[#allocation2 + $0x1d0] sm:$0xff]  }
 0x399   :  { %3702 = vrot.lane.b32.xlu0 %v3701_v6, %s4267_s23  ;;  %v3792_v30 = vld [vmem:[#allocation2 + $0x1b8] sm:$0xff]   ;;  %v922_v46 = vpack.c.bf16 %v4736_v52, %v4736_v52 }
 0x39a   :  { %3697 = vrot.lane.b32.xlu1 %v3696_v23, %s4267_s23  ;;  %v3793_v10 = vld [vmem:[#allocation2 + $0x138] sm:$0xff]  }
 0x39b   :  { %v3797_v40 = vld [vmem:[#allocation2 + $0x1d8] sm:$0xff]  }
 0x40b   :  { %v4748_v58 = vpop.permute.xlu0 %3702 }
 0x40c   :  { %v3705_v4 = vunpack.i.h.bf16 %v4748_v58  ;;  %v3704_v59 = vunpack.i.l.bf16 %v4748_v58  ;;  %v3698_v60 = vpop.permute.xlu1 %3697 }
 0x40d   :  { %v3700_v44 = vunpack.i.h.bf16 %v3698_v60  ;;  %v3699_v32 = vunpack.i.l.bf16 %v3698_v60 }
 0x40e   :  { %v911_v16 = vsel %vm401_vm1, %v3704_v59, %v3705_v4  ;;  %v915_v1 = vsel %vm401_vm1, %v4743_v43, %v3704_v59 }
 0x40f   :  { %v902_v35 = vsel %vm401_vm1, %v3699_v32, %v3700_v44  ;;  %v914_v63 = vsel %vm401_vm1, %v856_v37, %v3699_v32  ;;  %v921_v25 = vpack.c.bf16 %v911_v16, %v911_v16  ;;  %v920_v29 = vpack.c.bf16 %v915_v1, %v915_v1  ;;  %v3813_v1 = vld [vmem:[#allocation5 + $0xa8] ss:$40 sps:$4 sm:$0xff]  }
 0x410   :  { %v918_v36 = vpack.c.bf16 %v902_v35, %v902_v35  ;;  %v917_v3 = vpack.c.bf16 %v914_v63, %v914_v63 }
 0x412   :  { %1439 = vmatprep.mubr.bf16.mxu0 %v917_v3  ;;  %1480 = vmatmul.mubr.bf16.vlgmr.msra.gmra.mrb[8].mxu1 %v918_v36 }
 0x413   :  { %1528 = vmatpush1.bf16.msra.mxu1 %v3771_v2  ;;  %1440 = vmatmul.mubr.bf16.vlgmr.msra.gmra.mrb[8].mxu0 %v916_v9 }
 0x414   :  { %3640 = vmatpush3.bf16.msra.mxu0 %v3772_v45  ;;  %3406 = vmatprep.mubr.msk.bf16.mxu1 %vm401_vm1, %v923_v31 }
 0x415   :  { %1519 = vmatprep.mubr.bf16.mxu0 %v921_v25  ;;  %1529 = vmatprep.subr.bf16.mxu1 %v4272_v0 }
 0x416   :  { %3641 = vmatprep.subr.bf16.mxu0 %v3773_v38 }
 0x417   :  { %1530 = vmatpush1.bf16.msra.mxu1 %v3774_v11 }
 0x418   :  { %3642 = vmatpush3.bf16.msra.mxu0 %v3775_v47  ;;  %1531 = vmatprep.subr.bf16.mxu1 %v4272_v0 }
 0x419   :  { %3643 = vmatprep.subr.bf16.mxu0 %v3776_v17 }
 0x41b   :  { %1532 = vmatpush1.bf16.msra.mxu1 %v3777_v18 }
 0x41c   :  { %3644 = vmatpush3.bf16.msra.mxu0 %v3778_v24  ;;  %1533 = vmatprep.subr.bf16.mxu1 %v4272_v0 }
 0x41d   :  { %3645 = vmatprep.subr.bf16.mxu0 %v3779_v61 }
 0x41f   :  { %1534 = vmatpush1.bf16.msra.mxu1 %v3780_v19 }
 0x420   :  { %3646 = vmatpush3.bf16.msra.mxu0 %v3781_v14  ;;  %1535 = vmatprep.subr.bf16.mxu1 %v4272_v0 }
 0x421   :  { %3647 = vmatprep.subr.bf16.mxu0 %v3782_v49 }
 0x423   :  { %1536 = vmatpush1.bf16.msra.mxu1 %v3783_v15  ;;  %v3798_v15 = vld [vmem:[#allocation5] ss:$40 sps:$4 sm:$0xff]  }
 0x424   :  { %3648 = vmatpush3.bf16.msra.mxu0 %v3784_v57  ;;  %1537 = vmatprep.subr.bf16.mxu1 %v4272_v0  ;;  %v3800_v57 = vld [vmem:[#allocation5 + $0x4] ss:$40 sps:$4 sm:$0xff]  }
 0x425   :  { %3649 = vmatprep.subr.bf16.mxu0 %v3785_v20  ;;  %v3801_v20 = vld [vmem:[#allocation5 + $0x8] ss:$40 sps:$4 sm:$0xff]  }
 0x427   :  { %1538 = vmatpush1.bf16.msra.mxu1 %v3786_v21  ;;  %v3803_v21 = vld [vmem:[#allocation5 + $0xc] ss:$40 sps:$4 sm:$0xff]  }
 0x428   :  { %3650 = vmatpush3.bf16.msra.mxu0 %v3787_v26  ;;  %1539 = vmatprep.subr.bf16.mxu1 %v4272_v0  ;;  %v3806_v26 = vld [vmem:[#allocation5 + $0x54] ss:$40 sps:$4 sm:$0xff]  }
 0x429   :  { %3651 = vmatprep.subr.bf16.mxu0 %v3788_v8  ;;  %v3809_v8 = vld [vmem:[#allocation5 + $0x5c] ss:$40 sps:$4 sm:$0xff]  }
 0x42b   :  { %1540 = vmatpush1.bf16.msra.mxu1 %v3789_v7  ;;  %v3804_v7 = vld [vmem:[#allocation5 + $0x50] ss:$40 sps:$4 sm:$0xff]  }
 0x42c   :  { %3652 = vmatpush3.bf16.msra.mxu0 %v3790_v22  ;;  %1541 = vmatprep.subr.bf16.mxu1 %v4272_v0  ;;  %v3807_v22 = vld [vmem:[#allocation5 + $0x58] ss:$40 sps:$4 sm:$0xff]  }
 0x42d   :  { %3653 = vmatprep.subr.bf16.mxu0 %v3791_v27  ;;  %v3812_v27 = vld [vmem:[#allocation5 + $0xa4] ss:$40 sps:$4 sm:$0xff]  }
 0x42f   :  { %1542 = vmatpush1.bf16.msra.mxu1 %v3792_v30  ;;  %v3815_v30 = vld [vmem:[#allocation5 + $0xac] ss:$40 sps:$4 sm:$0xff]  }
 0x430   :  { %3654 = vmatpush3.bf16.msra.mxu0 %v3793_v10  ;;  %1543 = vmatprep.subr.bf16.mxu1 %v4272_v0  ;;  %v3810_v10 = vld [vmem:[#allocation5 + $0xa0] ss:$40 sps:$4 sm:$0xff]  }
 0x431   :  { %2613 = vmatprep.subr.bf16.mxu0 %v3800_v57  ;;  %v3873_v57 = vld [vmem:[#allocation5 + $0x3c8] ss:$40 sps:$4 sm:$0xff]  }
 0x433   :  { %1520 = vmatmul.mubr.bf16.vlgmr.msra.gmra.mrb[12].mxu0 %v920_v29  ;;  %1544 = vmatpush1.bf16.msra.mxu1 %v3794_v28  ;;  %v3818_v28 = vld [vmem:[#allocation5 + $0xf4] ss:$40 sps:$4 sm:$0xff]  }
 0x434   :  { %1545 = vmatprep.subr.bf16.mxu1 %v4272_v0  ;;  %2614 = vmatpush1.bf16.msra.mxu0 %v3798_v15  ;;  %v3821_v29 = vld [vmem:[#allocation5 + $0xfc] ss:$40 sps:$4 sm:$0xff]   ;;  %v3870_v15 = vld [vmem:[#allocation5 + $0x3c0] ss:$40 sps:$4 sm:$0xff]  }
 0x435   :  { %2615 = vmatprep.subr.bf16.mxu0 %v3806_v26  ;;  %v3876_v26 = vld [vmem:[#allocation5 + $0x410] ss:$40 sps:$4 sm:$0xff]  }
 0x437   :  { %1546 = vmatpush1.bf16.msra.mxu1 %v3795_v5  ;;  %v3816_v5 = vld [vmem:[#allocation5 + $0xf0] ss:$40 sps:$4 sm:$0xff]  }
 0x438   :  { %1547 = vmatprep.subr.bf16.mxu1 %v4272_v0  ;;  %2616 = vmatpush1.bf16.msra.mxu0 %v3804_v7  ;;  %v3882_v7 = vld [vmem:[#allocation5 + $0x460] ss:$40 sps:$4 sm:$0xff]  }
 0x439   :  { %2617 = vmatprep.subr.bf16.mxu0 %v3812_v27  ;;  %v3885_v27 = vld [vmem:[#allocation5 + $0x468] ss:$40 sps:$4 sm:$0xff]  }
 0x43b   :  { %1548 = vmatpush1.bf16.msra.mxu1 %v3796_v39  ;;  %v3819_v39 = vld [vmem:[#allocation5 + $0xf8] ss:$40 sps:$4 sm:$0xff]  }
 0x43c   :  { %1549 = vmatprep.subr.bf16.mxu1 %v4272_v0  ;;  %2618 = vmatpush1.bf16.msra.mxu0 %v3810_v10  ;;  %v3890_v10 = vld [vmem:[#allocation5 + $0x4b4] ss:$40 sps:$4 sm:$0xff]  }
 0x43d   :  { %2619 = vmatprep.subr.bf16.mxu0 %v3818_v28  ;;  %v3888_v28 = vld [vmem:[#allocation5 + $0x4b0] ss:$40 sps:$4 sm:$0xff]  }
 0x43f   :  { %1550 = vmatpush1.bf16.msra.mxu1 %v3797_v40  ;;  %v3824_v40 = vld [vmem:[#allocation5 + $0x144] ss:$40 sps:$4 sm:$0xff]  }
 0x440   :  { %2654 = vmatprep.subr.bf16.mxu1 %v3803_v21  ;;  %2620 = vmatpush1.bf16.msra.mxu0 %v3816_v5  ;;  %v3881_v21 = vld [vmem:[#allocation5 + $0x41c] ss:$40 sps:$4 sm:$0xff]  }
 0x441   :  { %2621 = vmatprep.subr.bf16.mxu0 %v3824_v40  ;;  %v3896_v5 = vld [vmem:[#allocation5 + $0x14] ss:$40 sps:$4 sm:$0xff]  }
 0x442   :  { %1560 = vmatmul.mubr.bf16.vlgmr.msra.gmra.mrb[12].mxu1 %v922_v46  ;;  %v3827_v46 = vld [vmem:[#allocation5 + $0x14c] ss:$40 sps:$4 sm:$0xff]  }
 0x443   :  { %2655 = vmatpush1.bf16.msra.mxu1 %v3801_v20  ;;  %v3878_v20 = vld [vmem:[#allocation5 + $0x414] ss:$40 sps:$4 sm:$0xff]  }
 0x444   :  { %2656 = vmatprep.subr.bf16.mxu1 %v3809_v8  ;;  %v3879_v8 = vld [vmem:[#allocation5 + $0x418] ss:$40 sps:$4 sm:$0xff]  }
 0x447   :  { %2657 = vmatpush1.bf16.msra.mxu1 %v3807_v22  ;;  %v3884_v22 = vld [vmem:[#allocation5 + $0x464] ss:$40 sps:$4 sm:$0xff]  }
 0x448   :  { %2658 = vmatprep.subr.bf16.mxu1 %v3815_v30  ;;  %v3887_v30 = vld [vmem:[#allocation5 + $0x46c] ss:$40 sps:$4 sm:$0xff]  }
 0x44b   :  { %2659 = vmatpush1.bf16.msra.mxu1 %v3813_v1  ;;  %v3893_v1 = vld [vmem:[#allocation5 + $0x4bc] ss:$40 sps:$4 sm:$0xff]  }
 0x44c   :  { %2660 = vmatprep.subr.bf16.mxu1 %v3821_v29  ;;  %v3891_v29 = vld [vmem:[#allocation5 + $0x4b8] ss:$40 sps:$4 sm:$0xff]  }
 0x44f   :  { %2661 = vmatpush1.bf16.msra.mxu1 %v3819_v39  ;;  %v3899_v39 = vld [vmem:[#allocation5 + $0x1c] ss:$40 sps:$4 sm:$0xff]  }
 0x450   :  { %2662 = vmatprep.subr.bf16.mxu1 %v3827_v46 }
 0x4e5   :  { %v3633_v48 = vpop.f32.mrb[8].mxu1 }
 0x4e6   :  { %v3611_v50 = vpop.f32.mrb[8].mxu0  ;;  %v3634_v51 = vpop.f32.mrb[9].mxu1 }
 0x4e7   :  { %v3635_v41 = vadd.f32 %v3634_v51, %v3633_v48  ;;  %v3612_v33 = vpop.f32.mrb[9].mxu0  ;;  %v3636_v53 = vpop.f32.mrb[10].mxu1  ;;  %v3822_v48 = vld [vmem:[#allocation5 + $0x140] ss:$40 sps:$4 sm:$0xff]  }
 0x4e8   :  { %v3613_v54 = vadd.f32 %v3612_v33, %v3611_v50  ;;  %v3614_v34 = vpop.f32.mrb[10].mxu0  ;;  %v3637_v42 = vpop.f32.mrb[11].mxu1  ;;  %v3825_v50 = vld [vmem:[#allocation5 + $0x148] ss:$40 sps:$4 sm:$0xff]   ;;  %2622 = vmatpush1.bf16.msra.mxu0 %v3822_v48 }
 0x4e9   :  { %v3615_v6 = vpop.f32.mrb[11].mxu0  ;;  %2663 = vmatpush1.bf16.msra.mxu1 %v3825_v50  ;;  %v3830_v34 = vld [vmem:[#allocation5 + $0x194] ss:$40 sps:$4 sm:$0xff]   ;;  %v3831_v42 = vld [vmem:[#allocation5 + $0x198] ss:$40 sps:$4 sm:$0xff]  }
 0x4ea   :  { %v1482_v55 = vadd.f32 %v3635_v41, %v3613_v54  ;;  %v3828_v54 = vld [vmem:[#allocation5 + $0x190] ss:$40 sps:$4 sm:$0xff]   ;;  %v3833_v6 = vld [vmem:[#allocation5 + $0x19c] ss:$40 sps:$4 sm:$0xff]   ;;  %2623 = vmatprep.subr.bf16.mxu0 %v3830_v34 }
 0x4eb   :  { %2664 = vmatprep.subr.bf16.mxu1 %v3833_v6 }
 0x4ec   :  { %2624 = vmatpush1.bf16.msra.mxu0 %v3828_v54 }
 0x4ed   :  { %2665 = vmatpush1.bf16.msra.mxu1 %v3831_v42 }
 0x506   :  { %v3655_v43 = vpop.f32.mrb[12].mxu0 }
 0x507   :  { %v3656_v23 = vpop.f32.mrb[13].mxu0 }
 0x508   :  { %v3657_v56 = vadd.f32 %v3656_v23, %v3655_v43  ;;  %v3658_v0 = vpop.f32.mrb[14].mxu0 }
 0x509   :  { %v3659_v58 = vpop.f32.mrb[15].mxu0  ;;  %v3839_v0 = vld [vmem:[#allocation5 + $0x1ec] ss:$40 sps:$4 sm:$0xff]  }
 0x50a   :  { %v1522_v4 = vadd.f32 %v3657_v56, %v1482_v55  ;;  %v1607_v55 = vld [vmem:[%s4972_s5] sm:$0x1]  ;;  %v3836_v56 = vld [vmem:[#allocation5 + $0x1e4] ss:$40 sps:$4 sm:$0xff]   ;;  %2666 = vmatprep.subr.bf16.mxu1 %v3839_v0 }
 0x50b   :  { %v1609_v58 = vld [vmem:[%s4973_s6] sm:$0x1]  ;;  %2625 = vmatprep.subr.bf16.mxu0 %v3836_v56 }
 0x515   :  { %v1561_v59 = vpop.f32.mrb[12].mxu1 }
 0x516   :  { %v4778_v52 = vadd.f32 %v1561_v59, %v1522_v4  ;;  %v1563_v60 = vpop.f32.mrb[13].mxu1  ;;  %v3834_v4 = vld [vmem:[#allocation5 + $0x1e0] ss:$40 sps:$4 sm:$0xff]  }
 0x517   :  { %v1564_v44 = vpop.f32.mrb[14].mxu1  ;;  %v3837_v59 = vld [vmem:[#allocation5 + $0x1e8] ss:$40 sps:$4 sm:$0xff]   ;;  %2626 = vmatpush1.bf16.msra.mxu0 %v3834_v4 }
 0x518   :  { %v1567_v32 = vsel %vm392_vm2, %v4778_v52, 0.0  ;;  %v1565_v37 = vpop.f32.mrb[15].mxu1  ;;  %2667 = vmatpush1.bf16.msra.mxu1 %v3837_v59  ;;  %v3894_v4 = vld [vmem:[#allocation5 + $0x10] ss:$40 sps:$4 sm:$0xff]  }
 0x519   :  { %v1568_v62 = vrot.slane %v1567_v32, 4  ;;  %v3845_v37 = vld [vmem:[#allocation5 + $0x23c] ss:$40 sps:$4 sm:$0xff]   ;;  %v3897_v59 = vld [vmem:[#allocation5 + $0x18] ss:$40 sps:$4 sm:$0xff]  }
 0x51a   :  { %2668 = vmatprep.subr.bf16.mxu1 %v3845_v37  ;;  %v3903_v37 = vld [vmem:[#allocation5 + $0x68] ss:$40 sps:$4 sm:$0xff]  }
 0x51b   :  { %v1569_v35 = vadd.f32 %v1568_v62, %v1567_v32  ;;  %v3842_v32 = vld [vmem:[#allocation5 + $0x234] ss:$40 sps:$4 sm:$0xff]   ;;  %v3840_v62 = vld [vmem:[#allocation5 + $0x230] ss:$40 sps:$4 sm:$0xff]  }
 0x51c   :  { %2627 = vmatprep.subr.bf16.mxu0 %v3842_v32  ;;  %v3900_v32 = vld [vmem:[#allocation5 + $0x60] ss:$40 sps:$4 sm:$0xff]  }
 0x51d   :  { %v1570_v63 = vrot.slane %v1569_v35, 2  ;;  %2628 = vmatpush1.bf16.msra.mxu0 %v3840_v62  ;;  %v3908_v62 = vld [vmem:[#allocation5 + $0xb4] ss:$40 sps:$4 sm:$0xff]  }
 0x51f   :  { %v1571_v2 = vadd.f32 %v1570_v63, %v1569_v35  ;;  %v3843_v35 = vld [vmem:[#allocation5 + $0x238] ss:$40 sps:$4 sm:$0xff]  }
 0x520   :  { %2669 = vmatpush1.bf16.msra.mxu1 %v3843_v35  ;;  %v3911_v35 = vld [vmem:[#allocation5 + $0xbc] ss:$40 sps:$4 sm:$0xff]  }
 0x521   :  { %v1572_v36 = vrot.slane %v1571_v2, 1 }
 0x523   :  { %v1573_v3 = vadd.f32 %v1572_v36, %v1571_v2  ;;  %v3848_v2 = vld [vmem:[#allocation5 + $0x284] ss:$40 sps:$4 sm:$0xff]  }
 0x524   :  { %v3851_v36 = vld [vmem:[#allocation5 + $0x28c] ss:$40 sps:$4 sm:$0xff]   ;;  %2629 = vmatprep.subr.bf16.mxu0 %v3848_v2  ;;  %v3909_v2 = vld [vmem:[#allocation5 + $0xb8] ss:$40 sps:$4 sm:$0xff]  }
 0x525   :  { %1575 = vrot.lane.b32.xlu1 %v1573_v3, %s4267_s23  ;;  %2670 = vmatprep.subr.bf16.mxu1 %v3851_v36  ;;  %v3914_v36 = vld [vmem:[#allocation5 + $0x104] ss:$40 sps:$4 sm:$0xff]  }
 0x597   :  { %v1576_v45 = vpop.permute.xlu1 %1575 }
 0x598   :  { %v1578_v16 = vadd.f32 %v1576_v45, %v1573_v3  ;;  %v3846_v3 = vld [vmem:[#allocation5 + $0x280] ss:$40 sps:$4 sm:$0xff]  }
 0x599   :  { %v3849_v45 = vld [vmem:[#allocation5 + $0x288] ss:$40 sps:$4 sm:$0xff]   ;;  %2630 = vmatpush1.bf16.msra.mxu0 %v3846_v3  ;;  %v3917_v3 = vld [vmem:[#allocation5 + $0x10c] ss:$40 sps:$4 sm:$0xff]  }
 0x59a   :  { %v4783_v9 = vmul.f32 0.125, %v1578_v16  ;;  %2671 = vmatpush1.bf16.msra.mxu1 %v3849_v45  ;;  %v3854_v16 = vld [vmem:[#allocation5 + $0x2d4] ss:$40 sps:$4 sm:$0xff]   ;;  %v3912_v45 = vld [vmem:[#allocation5 + $0x100] ss:$40 sps:$4 sm:$0xff]  }
 0x59b   :  { %2631 = vmatprep.subr.bf16.mxu0 %v3854_v16  ;;  %v3915_v16 = vld [vmem:[#allocation5 + $0x108] ss:$40 sps:$4 sm:$0xff]  }
 0x59c   :  { %1582 = vrot.lane.b32.xlu0 %v4783_v9, %s4267_s23 }
 0x60e   :  { %v1583_v31 = vpop.permute.xlu0 %1582 }
 0x60f   :  { %v1585_v38 = vsel %vm401_vm1, %v4783_v9, %v1583_v31  ;;  %v3852_v31 = vld [vmem:[#allocation5 + $0x2d0] ss:$40 sps:$4 sm:$0xff]  }
 0x610   :  { %v1589_v25 = vrot.slane %v1585_v38, %v4529_v13  ;;  %v3855_v38 = vld [vmem:[#allocation5 + $0x2d8] ss:$40 sps:$4 sm:$0xff]   ;;  %2632 = vmatpush1.bf16.msra.mxu0 %v3852_v31  ;;  %v3923_v31 = vld [vmem:[#allocation5 + $0x15c] ss:$40 sps:$4 sm:$0xff]  }
 0x612   :  { %v1590_v11 = vsub.f32 %v4778_v52, %v1589_v25  ;;  %v3860_v25 = vld [vmem:[#allocation5 + $0x324] ss:$40 sps:$4 sm:$0xff]  }
 0x613   :  { %2633 = vmatprep.subr.bf16.mxu0 %v3860_v25  ;;  %v3921_v25 = vld [vmem:[#allocation5 + $0x158] ss:$40 sps:$4 sm:$0xff]  }
 0x614   :  { %v1591_v47 = vmul.f32 %v1590_v11, %v1590_v11  ;;  %v3863_v11 = vld [vmem:[#allocation5 + $0x32c] ss:$40 sps:$4 sm:$0xff]  }
 0x616   :  { %v1592_v17 = vsel %vm392_vm2, %v1591_v47, 0.0  ;;  %v3858_v47 = vld [vmem:[#allocation5 + $0x320] ss:$40 sps:$4 sm:$0xff]  }
 0x617   :  { %v1593_v18 = vrot.slane %v1592_v17, 4  ;;  %2634 = vmatpush1.bf16.msra.mxu0 %v3858_v47  ;;  %v3929_v47 = vld [vmem:[#allocation5 + $0x1ac] ss:$40 sps:$4 sm:$0xff]  }
 0x619   :  { %v1594_v24 = vadd.f32 %v1593_v18, %v1592_v17  ;;  %v3861_v17 = vld [vmem:[#allocation5 + $0x328] ss:$40 sps:$4 sm:$0xff]   ;;  %v3866_v18 = vld [vmem:[#allocation5 + $0x374] ss:$40 sps:$4 sm:$0xff]  }
 0x61a   :  { %2635 = vmatprep.subr.bf16.mxu0 %v3866_v18  ;;  %v3927_v18 = vld [vmem:[#allocation5 + $0x1a8] ss:$40 sps:$4 sm:$0xff]  }
 0x61b   :  { %v1595_v61 = vrot.slane %v1594_v24, 2 }
 0x61d   :  { %v1596_v19 = vadd.f32 %v1595_v61, %v1594_v24  ;;  %v3869_v24 = vld [vmem:[#allocation5 + $0x37c] ss:$40 sps:$4 sm:$0xff]   ;;  %v3864_v61 = vld [vmem:[#allocation5 + $0x370] ss:$40 sps:$4 sm:$0xff]  }
 0x61e   :  { %2636 = vmatpush1.bf16.msra.mxu0 %v3864_v61  ;;  %v3935_v61 = vld [vmem:[#allocation5 + $0x1fc] ss:$40 sps:$4 sm:$0xff]  }
 0x61f   :  { %v1597_v14 = vrot.slane %v1596_v19, 1 }
 0x621   :  { %v1598_v49 = vadd.f32 %v1597_v14, %v1596_v19  ;;  %v3867_v19 = vld [vmem:[#allocation5 + $0x378] ss:$40 sps:$4 sm:$0xff]   ;;  %v3872_v14 = vld [vmem:[#allocation5 + $0x3c4] ss:$40 sps:$4 sm:$0xff]  }
 0x622   :  { %2637 = vmatprep.subr.bf16.mxu0 %v3872_v14  ;;  %v3933_v14 = vld [vmem:[#allocation5 + $0x1f8] ss:$40 sps:$4 sm:$0xff]  }
 0x623   :  { %1600 = vrot.lane.b32.xlu1 %v1598_v49, %s4267_s23  ;;  %2638 = vmatpush1.bf16.msra.mxu0 %v3870_v15  ;;  %v3941_v15 = vld [vmem:[#allocation5 + $0x24c] ss:$40 sps:$4 sm:$0xff]  }
 0x624   :  { %2639 = vmatprep.subr.bf16.mxu0 %v3878_v20  ;;  %v3939_v20 = vld [vmem:[#allocation5 + $0x248] ss:$40 sps:$4 sm:$0xff]  }
 0x627   :  { %2640 = vmatpush1.bf16.msra.mxu0 %v3876_v26  ;;  %v3947_v26 = vld [vmem:[#allocation5 + $0x29c] ss:$40 sps:$4 sm:$0xff]  }
 0x628   :  { %2641 = vmatprep.subr.bf16.mxu0 %v3884_v22  ;;  %v3950_v22 = vld [vmem:[#allocation5 + $0x2e4] ss:$40 sps:$4 sm:$0xff]  }
 0x62b   :  { %2642 = vmatpush1.bf16.msra.mxu0 %v3882_v7  ;;  %v3945_v7 = vld [vmem:[#allocation5 + $0x298] ss:$40 sps:$4 sm:$0xff]  }
 0x62c   :  { %2643 = vmatprep.subr.bf16.mxu0 %v3890_v10  ;;  %v3951_v10 = vld [vmem:[#allocation5 + $0x2e8] ss:$40 sps:$4 sm:$0xff]  }
 0x62f   :  { %2644 = vmatpush1.bf16.msra.mxu0 %v3888_v28  ;;  %v3959_v28 = vld [vmem:[#allocation5 + $0x33c] ss:$40 sps:$4 sm:$0xff]  }
 0x630   :  { %2695 = vmatprep.subr.bf16.mxu0 %v3896_v5  ;;  %v3957_v5 = vld [vmem:[#allocation5 + $0x338] ss:$40 sps:$4 sm:$0xff]  }
 0x695   :  { %v1601_v51 = vpop.permute.xlu1 %1600 }
 0x696   :  { %v1603_v41 = vadd.f32 %v1601_v51, %v1598_v49  ;;  %v3875_v49 = vld [vmem:[#allocation5 + $0x3cc] ss:$40 sps:$4 sm:$0xff]  }
 0x698   :  { %v1604_v33 = vmul.f32 0.125, %v1603_v41 }
 0x69a   :  { %v1605_v53 = vadd.f32 1e-05, %v1604_v33 }
 0x69c   :  { %4120 = vrsqrt.f32 %v1605_v53 }
 0x6a6   :  { %v4121_v43 = vpop.eup %4120 }
 0x6a7   :  { %v4796_v23 = vmul.f32 %v4121_v43, %v1607_v55 }
 0x6a9   :  { %1613 = vrot.lane.b32.xlu0 %v4796_v23, %s4267_s23  ;;  %v1610_v60 = vmul.f32 %v4796_v23, %v4783_v9  ;;  %v3857_v9 = vld [vmem:[#allocation5 + $0x2dc] ss:$40 sps:$4 sm:$0xff]  }
 0x6aa   :  { %2672 = vmatprep.subr.bf16.mxu1 %v3857_v9  ;;  %v3920_v9 = vld [vmem:[#allocation5 + $0x154] ss:$40 sps:$4 sm:$0xff]  }
 0x6ab   :  { %v4805_v44 = vsub.f32 %v1609_v58, %v1610_v60  ;;  %2673 = vmatpush1.bf16.msra.mxu1 %v3855_v38  ;;  %v3902_v60 = vld [vmem:[#allocation5 + $0x64] ss:$40 sps:$4 sm:$0xff]   ;;  %v3918_v38 = vld [vmem:[#allocation5 + $0x150] ss:$40 sps:$4 sm:$0xff]  }
 0x6ac   :  { %2674 = vmatprep.subr.bf16.mxu1 %v3863_v11  ;;  %v3926_v11 = vld [vmem:[#allocation5 + $0x1a4] ss:$40 sps:$4 sm:$0xff]  }
 0x6ad   :  { %v1626_v63 = vrot.slane %v4805_v44, %v4529_v13 }
 0x6af   :  { %1627 = vrot.lane.b32.xlu1 %v1626_v63, %s4267_s23  ;;  %2675 = vmatpush1.bf16.msra.mxu1 %v3861_v17  ;;  %v3906_v63 = vld [vmem:[#allocation5 + $0xb0] ss:$40 sps:$4 sm:$0xff]   ;;  %v3924_v17 = vld [vmem:[#allocation5 + $0x1a0] ss:$40 sps:$4 sm:$0xff]  }
 0x6b0   :  { %2676 = vmatprep.subr.bf16.mxu1 %v3869_v24  ;;  %v3932_v24 = vld [vmem:[#allocation5 + $0x1f4] ss:$40 sps:$4 sm:$0xff]  }
 0x6b3   :  { %2677 = vmatpush1.bf16.msra.mxu1 %v3867_v19  ;;  %v3930_v19 = vld [vmem:[#allocation5 + $0x1f0] ss:$40 sps:$4 sm:$0xff]  }
 0x6b4   :  { %2678 = vmatprep.subr.bf16.mxu1 %v3875_v49  ;;  %v3938_v49 = vld [vmem:[#allocation5 + $0x244] ss:$40 sps:$4 sm:$0xff]  }
 0x6b7   :  { %2679 = vmatpush1.bf16.msra.mxu1 %v3873_v57  ;;  %v3936_v57 = vld [vmem:[#allocation5 + $0x240] ss:$40 sps:$4 sm:$0xff]  }
 0x6b8   :  { %2680 = vmatprep.subr.bf16.mxu1 %v3881_v21  ;;  %v3944_v21 = vld [vmem:[#allocation5 + $0x294] ss:$40 sps:$4 sm:$0xff]  }
 0x6bb   :  { %2681 = vmatpush1.bf16.msra.mxu1 %v3879_v8  ;;  %v3942_v8 = vld [vmem:[#allocation5 + $0x290] ss:$40 sps:$4 sm:$0xff]  }
 0x6bc   :  { %2682 = vmatprep.subr.bf16.mxu1 %v3887_v30  ;;  %v3948_v30 = vld [vmem:[#allocation5 + $0x2e0] ss:$40 sps:$4 sm:$0xff]  }
 0x6bf   :  { %2683 = vmatpush1.bf16.msra.mxu1 %v3885_v27  ;;  %v3953_v27 = vld [vmem:[#allocation5 + $0x2ec] ss:$40 sps:$4 sm:$0xff]  }
 0x6c0   :  { %2684 = vmatprep.subr.bf16.mxu1 %v3893_v1  ;;  %v3956_v1 = vld [vmem:[#allocation5 + $0x334] ss:$40 sps:$4 sm:$0xff]  }
 0x6c3   :  { %2685 = vmatpush1.bf16.msra.mxu1 %v3891_v29  ;;  %v3954_v29 = vld [vmem:[#allocation5 + $0x330] ss:$40 sps:$4 sm:$0xff]  }
 0x6c4   :  { %2736 = vmatprep.subr.bf16.mxu1 %v3899_v39  ;;  %v3962_v39 = vld [vmem:[#allocation5 + $0x384] ss:$40 sps:$4 sm:$0xff]  }
 0x71b   :  { %v1614_v40 = vpop.permute.xlu0 %1613 }
 0x71c   :  { %v1616_v46 = vsel %vm401_vm1, %v4796_v23, %v1614_v40  ;;  %v3965_v40 = vld [vmem:[#allocation5 + $0x38c] ss:$40 sps:$4 sm:$0xff]  }
 0x71d   :  { %v1620_v48 = vrot.slane %v1616_v46, %v4529_v13  ;;  %v3960_v46 = vld [vmem:[#allocation5 + $0x380] ss:$40 sps:$4 sm:$0xff]  }
 0x71f   :  { %v1621_v41 = vmul.f32 %v1620_v48, %v4778_v52  ;;  %v3963_v48 = vld [vmem:[#allocation5 + $0x388] ss:$40 sps:$4 sm:$0xff]  }
 0x721   :  { %v1628_v50 = vpop.permute.xlu1 %1627 }
 0x722   :  { %v1630_v51 = vsel %vm401_vm1, %v4805_v44, %v1628_v50  ;;  %v3905_v44 = vld [vmem:[#allocation5 + $0x6c] ss:$40 sps:$4 sm:$0xff]  }
 0x723   :  { %v1634_v33 = vrot.slane %v1630_v51, %v4529_v13  ;;  %v3968_v50 = vld [vmem:[#allocation5 + $0x3d4] ss:$40 sps:$4 sm:$0xff]  }
 0x724   :  { %v3971_v51 = vld [vmem:[#allocation5 + $0x3dc] ss:$40 sps:$4 sm:$0xff]  }
 0x725   :  { %v1635_v53 = vadd.f32 %v1634_v33, %v1621_v41  ;;  %v3966_v41 = vld [vmem:[#allocation5 + $0x3d0] ss:$40 sps:$4 sm:$0xff]  }
 0x726   :  { %v3969_v33 = vld [vmem:[#allocation5 + $0x3d8] ss:$40 sps:$4 sm:$0xff]  }
 0x727   :  { %v3407_v54 = vmul.f32 -1.442695, %v1635_v53 }
 0x729   :  { %4122 = vpow2.f32 %v3407_v54  ;;  %v3977_v54 = vld [vmem:[#allocation5 + $0x42c] ss:$40 sps:$4 sm:$0xff]  }
 0x733   :  { %v4123_v34 = vpop.eup %4122 }
 0x734   :  { %v1639_v42 = vadd.f32 1.0, %v4123_v34  ;;  %v3972_v34 = vld [vmem:[#allocation5 + $0x420] ss:$40 sps:$4 sm:$0xff]  }
 0x736   :  { %4124 = vrcp.f32 %v1639_v42  ;;  %v3975_v42 = vld [vmem:[#allocation5 + $0x428] ss:$40 sps:$4 sm:$0xff]  }
 0x740   :  { %v4125_v6 = vpop.eup %4124 }
 0x741   :  { %v1642_v55 = vmul.f32 %v4125_v6, %v1635_v53  ;;  %v3974_v53 = vld [vmem:[#allocation5 + $0x424] ss:$40 sps:$4 sm:$0xff]   ;;  %v3980_v6 = vld [vmem:[#allocation5 + $0x474] ss:$40 sps:$4 sm:$0xff]  }
 0x743   :  { %v1644_v43 = vrot.slane %v1642_v55, 1 }
 0x745   :  { %v1646_v23 = vrot.slane %v1644_v43, 1  ;;  %v1649_v56 = vsel %vm1648_vm8, %v1642_v55, %v1644_v43  ;;  %v3983_v55 = vld [vmem:[#allocation5 + $0x47c] ss:$40 sps:$4 sm:$0xff]  }
 0x746   :  { %v4819_v52 = vpack.c.bf16 %v1649_v56, %v1649_v56  ;;  %v3986_v56 = vld [vmem:[#allocation5 + $0x4c4] ss:$40 sps:$4 sm:$0xff]  }
 0x747   :  { %v1650_v0 = vsel %vm1648_vm8, %v1644_v43, %v1646_v23  ;;  %v3978_v43 = vld [vmem:[#allocation5 + $0x470] ss:$40 sps:$4 sm:$0xff]  }
 0x748   :  { %v4817_v58 = vpack.c.bf16 %v1650_v0, %v1650_v0  ;;  %v3981_v23 = vld [vmem:[#allocation5 + $0x478] ss:$40 sps:$4 sm:$0xff]   ;;  %v3989_v0 = vld [vmem:[#allocation5 + $0x4cc] ss:$40 sps:$4 sm:$0xff]  }
 0x74a   :  { %2645 = vmatprep.mubr.bf16.mxu0 %v4817_v58  ;;  %2686 = vmatprep.mubr.bf16.mxu1 %v4817_v58 }
 0x74b   :  { %2646 = vmatmul.mubr.bf16.vlgmr.msra.gmra.mrb[16].mxu0 %v4819_v52  ;;  %2687 = vmatmul.mubr.bf16.vlgmr.msra.gmra.mrb[16].mxu1 %v4819_v52 }
 0x74c   :  { %2696 = vmatpush1.bf16.msra.mxu0 %v3894_v4  ;;  %2737 = vmatpush1.bf16.msra.mxu1 %v3897_v59  ;;  %v3984_v4 = vld [vmem:[#allocation5 + $0x4c0] ss:$40 sps:$4 sm:$0xff]  }
 0x74d   :  { %2727 = vmatprep.mubr.bf16.mxu0 %v4817_v58  ;;  %2768 = vmatprep.mubr.bf16.mxu1 %v4817_v58  ;;  %v3987_v59 = vld [vmem:[#allocation5 + $0x4c8] ss:$40 sps:$4 sm:$0xff]  }
 0x74e   :  { %2697 = vmatprep.subr.bf16.mxu0 %v3902_v60  ;;  %2738 = vmatprep.subr.bf16.mxu1 %v3905_v44  ;;  %v3992_v60 = vld [vmem:[#allocation5 + $0x24] ss:$40 sps:$4 sm:$0xff]   ;;  %v3990_v44 = vld [vmem:[#allocation5 + $0x20] ss:$40 sps:$4 sm:$0xff]  }
 0x750   :  { %2698 = vmatpush1.bf16.msra.mxu0 %v3900_v32  ;;  %2739 = vmatpush1.bf16.msra.mxu1 %v3903_v37  ;;  %v3995_v32 = vld [vmem:[#allocation5 + $0x74] ss:$40 sps:$4 sm:$0xff]   ;;  %v3993_v37 = vld [vmem:[#allocation5 + $0x70] ss:$40 sps:$4 sm:$0xff]  }
 0x751   :  { %2699 = vmatprep.subr.bf16.mxu0 %v3908_v62  ;;  %2740 = vmatprep.subr.bf16.mxu1 %v3911_v35  ;;  %v3998_v62 = vld [vmem:[#allocation5 + $0xc4] ss:$40 sps:$4 sm:$0xff]   ;;  %v3996_v35 = vld [vmem:[#allocation5 + $0xc0] ss:$40 sps:$4 sm:$0xff]  }
 0x754   :  { %2700 = vmatpush1.bf16.msra.mxu0 %v3906_v63  ;;  %2741 = vmatpush1.bf16.msra.mxu1 %v3909_v2  ;;  %v4001_v63 = vld [vmem:[#allocation5 + $0x114] ss:$40 sps:$4 sm:$0xff]   ;;  %v3999_v2 = vld [vmem:[#allocation5 + $0x110] ss:$40 sps:$4 sm:$0xff]  }
 0x755   :  { %2701 = vmatprep.subr.bf16.mxu0 %v3914_v36  ;;  %2742 = vmatprep.subr.bf16.mxu1 %v3917_v3  ;;  %v4004_v36 = vld [vmem:[#allocation5 + $0x164] ss:$40 sps:$4 sm:$0xff]   ;;  %v4002_v3 = vld [vmem:[#allocation5 + $0x160] ss:$40 sps:$4 sm:$0xff]  }
 0x758   :  { %2702 = vmatpush1.bf16.msra.mxu0 %v3912_v45  ;;  %2743 = vmatpush1.bf16.msra.mxu1 %v3915_v16  ;;  %v4007_v45 = vld [vmem:[#allocation5 + $0x1b4] ss:$40 sps:$4 sm:$0xff]   ;;  %v4005_v16 = vld [vmem:[#allocation5 + $0x1b0] ss:$40 sps:$4 sm:$0xff]  }
 0x759   :  { %2703 = vmatprep.subr.bf16.mxu0 %v3920_v9  ;;  %2744 = vmatprep.subr.bf16.mxu1 %v3923_v31  ;;  %v4010_v9 = vld [vmem:[#allocation5 + $0x204] ss:$40 sps:$4 sm:$0xff]   ;;  %v4013_v31 = vld [vmem:[#allocation5 + $0x254] ss:$40 sps:$4 sm:$0xff]  }
 0x75c   :  { %2704 = vmatpush1.bf16.msra.mxu0 %v3918_v38  ;;  %2745 = vmatpush1.bf16.msra.mxu1 %v3921_v25  ;;  %v4011_v38 = vld [vmem:[#allocation5 + $0x250] ss:$40 sps:$4 sm:$0xff]   ;;  %v4016_v25 = vld [vmem:[#allocation5 + $0x2a4] ss:$40 sps:$4 sm:$0xff]  }
 0x75d   :  { %2705 = vmatprep.subr.bf16.mxu0 %v3926_v11  ;;  %2746 = vmatprep.subr.bf16.mxu1 %v3929_v47  ;;  %v4014_v11 = vld [vmem:[#allocation5 + $0x2a0] ss:$40 sps:$4 sm:$0xff]   ;;  %v4019_v47 = vld [vmem:[#allocation5 + $0x2f4] ss:$40 sps:$4 sm:$0xff]  }
 0x760   :  { %2706 = vmatpush1.bf16.msra.mxu0 %v3924_v17  ;;  %2747 = vmatpush1.bf16.msra.mxu1 %v3927_v18  ;;  %v4017_v17 = vld [vmem:[#allocation5 + $0x2f0] ss:$40 sps:$4 sm:$0xff]   ;;  %v4022_v18 = vld [vmem:[#allocation5 + $0x344] ss:$40 sps:$4 sm:$0xff]  }
 0x761   :  { %2707 = vmatprep.subr.bf16.mxu0 %v3932_v24  ;;  %2748 = vmatprep.subr.bf16.mxu1 %v3935_v61  ;;  %v4020_v24 = vld [vmem:[#allocation5 + $0x340] ss:$40 sps:$4 sm:$0xff]   ;;  %v4025_v61 = vld [vmem:[#allocation5 + $0x394] ss:$40 sps:$4 sm:$0xff]  }
 0x764   :  { %2708 = vmatpush1.bf16.msra.mxu0 %v3930_v19  ;;  %2749 = vmatpush1.bf16.msra.mxu1 %v3933_v14  ;;  %v4023_v19 = vld [vmem:[#allocation5 + $0x390] ss:$40 sps:$4 sm:$0xff]   ;;  %v4028_v14 = vld [vmem:[#allocation5 + $0x3e4] ss:$40 sps:$4 sm:$0xff]  }
 0x765   :  { %2709 = vmatprep.subr.bf16.mxu0 %v3938_v49  ;;  %2750 = vmatprep.subr.bf16.mxu1 %v3941_v15  ;;  %v4026_v49 = vld [vmem:[#allocation5 + $0x3e0] ss:$40 sps:$4 sm:$0xff]   ;;  %v4031_v15 = vld [vmem:[#allocation5 + $0x434] ss:$40 sps:$4 sm:$0xff]  }
 0x768   :  { %2710 = vmatpush1.bf16.msra.mxu0 %v3936_v57  ;;  %2751 = vmatpush1.bf16.msra.mxu1 %v3939_v20  ;;  %v4029_v57 = vld [vmem:[#allocation5 + $0x430] ss:$40 sps:$4 sm:$0xff]   ;;  %v4034_v20 = vld [vmem:[#allocation5 + $0x484] ss:$40 sps:$4 sm:$0xff]  }
 0x769   :  { %2711 = vmatprep.subr.bf16.mxu0 %v3944_v21  ;;  %2752 = vmatprep.subr.bf16.mxu1 %v3947_v26  ;;  %v4032_v21 = vld [vmem:[#allocation5 + $0x480] ss:$40 sps:$4 sm:$0xff]   ;;  %v4037_v26 = vld [vmem:[#allocation5 + $0x4d4] ss:$40 sps:$4 sm:$0xff]  }
 0x76c   :  { %2712 = vmatpush1.bf16.msra.mxu0 %v3942_v8  ;;  %2753 = vmatpush1.bf16.msra.mxu1 %v3945_v7  ;;  %v4035_v8 = vld [vmem:[#allocation5 + $0x4d0] ss:$40 sps:$4 sm:$0xff]   ;;  %v4038_v7 = vld [vmem:[%s4977_s10 + $0x40] sm:$0xff]  }
 0x76d   :  { %2713 = vmatprep.subr.bf16.mxu0 %v3950_v22  ;;  %2754 = vmatprep.subr.bf16.mxu1 %v3953_v27  ;;  %v4039_v22 = vld [vmem:[%s4977_s10] sm:$0xff]   ;;  %v4040_v27 = vld [vmem:[%s4977_s10 + $0x48] sm:$0xff]  }
 0x770   :  { %2714 = vmatpush1.bf16.msra.mxu0 %v3948_v30  ;;  %2755 = vmatpush1.bf16.msra.mxu1 %v3951_v10  ;;  %v4041_v30 = vld [vmem:[%s4977_s10 + $0x8] sm:$0xff]   ;;  %v4043_v10 = vld [vmem:[%s4977_s10 + $0x10] sm:$0xff]  }
 0x771   :  { %2715 = vmatprep.subr.bf16.mxu0 %v3956_v1  ;;  %2756 = vmatprep.subr.bf16.mxu1 %v3959_v28  ;;  %v4044_v1 = vld [vmem:[%s4977_s10 + $0x58] sm:$0xff]  }
 0x772   :  { %v4045_v28 = vld [vmem:[%s4977_s10 + $0x18] sm:$0xff]  }
 0x774   :  { %2716 = vmatpush1.bf16.msra.mxu0 %v3954_v29  ;;  %2757 = vmatpush1.bf16.msra.mxu1 %v3957_v5  ;;  %v4046_v29 = vld [vmem:[%s4977_s10 + $0x60] sm:$0xff]  }
 0x775   :  { %2717 = vmatprep.subr.bf16.mxu0 %v3962_v39  ;;  %2758 = vmatprep.subr.bf16.mxu1 %v3965_v40  ;;  %v4047_v5 = vld [vmem:[%s4977_s10 + $0x20] sm:$0xff]   ;;  %v4048_v39 = vld [vmem:[%s4977_s10 + $0x68] sm:$0xff]  }
 0x776   :  { %v4049_v40 = vld [vmem:[%s4977_s10 + $0x28] sm:$0xff]  }
 0x778   :  { %2718 = vmatpush1.bf16.msra.mxu0 %v3960_v46  ;;  %2759 = vmatpush1.bf16.msra.mxu1 %v3963_v48  ;;  %v4050_v46 = vld [vmem:[%s4977_s10 + $0x70] sm:$0xff]  }
 0x779   :  { %2719 = vmatprep.subr.bf16.mxu0 %v3968_v50  ;;  %2760 = vmatprep.subr.bf16.mxu1 %v3971_v51  ;;  %v4051_v48 = vld [vmem:[%s4977_s10 + $0x30] sm:$0xff]   ;;  %v4052_v50 = vld [vmem:[%s4977_s10 + $0x78] sm:$0xff]  }
 0x77a   :  { %v4053_v51 = vld [vmem:[%s4977_s10 + $0x38] sm:$0xff]  }
 0x77c   :  { %2720 = vmatpush1.bf16.msra.mxu0 %v3966_v41  ;;  %2761 = vmatpush1.bf16.msra.mxu1 %v3969_v33  ;;  %v4882_v41 = vld [vmem:[%s4979_s12] sm:$0xff]  ;;  %v4885_v33 = vsub.s32 1, %v4526_v12 }
 0x77d   :  { %2721 = vmatprep.subr.bf16.mxu0 %v3974_v53  ;;  %2762 = vmatprep.subr.bf16.mxu1 %v3977_v54  ;;  %v2823_v53 = vrot.slane %v4882_v41, %v4529_v13 }
 0x77e   :  { %v2827_v54 = vrot.slane %v4882_v41, %v4885_v33 }
 0x780   :  { %2722 = vmatpush1.bf16.msra.mxu0 %v3972_v34  ;;  %2763 = vmatpush1.bf16.msra.mxu1 %v3975_v42 }
 0x781   :  { %2723 = vmatprep.subr.bf16.mxu0 %v3980_v6  ;;  %2764 = vmatprep.subr.bf16.mxu1 %v3983_v55 }
 0x784   :  { %2724 = vmatpush1.bf16.msra.mxu0 %v3978_v43  ;;  %2765 = vmatpush1.bf16.msra.mxu1 %v3981_v23 }
 0x785   :  { %2725 = vmatprep.subr.bf16.mxu0 %v3986_v56  ;;  %2766 = vmatprep.subr.bf16.mxu1 %v3989_v0 }
 0x788   :  { %2726 = vmatpush1.bf16.msra.mxu0 %v3984_v4  ;;  %2767 = vmatpush1.bf16.msra.mxu1 %v3987_v59 }
 0x789   :  { %2777 = vmatprep.subr.bf16.mxu0 %v3992_v60  ;;  %3661 = vmatprep.subr.bf16.mxu1 %v4038_v7 }
 0x78b   :  { %2728 = vmatmul.mubr.bf16.vlgmr.msra.gmra.mrb[20].mxu0 %v4819_v52  ;;  %2769 = vmatmul.mubr.bf16.vlgmr.msra.gmra.mrb[20].mxu1 %v4819_v52 }
 0x78c   :  { %2778 = vmatpush1.bf16.msra.mxu0 %v3990_v44  ;;  %2809 = vmatprep.mubr.bf16.mxu0 %v4817_v58  ;;  %v4008_v58 = vld [vmem:[#allocation5 + $0x200] ss:$40 sps:$4 sm:$0xff]  }
 0x78d   :  { %2779 = vmatprep.subr.bf16.mxu0 %v3995_v32  ;;  %3662 = vmatpush3.bf16.msra.mxu1 %v4039_v22 }
 0x78e   :  { %3663 = vmatprep.subr.bf16.mxu1 %v4040_v27 }
 0x790   :  { %2780 = vmatpush1.bf16.msra.mxu0 %v3993_v37 }
 0x791   :  { %2781 = vmatprep.subr.bf16.mxu0 %v3998_v62  ;;  %3664 = vmatpush3.bf16.msra.mxu1 %v4041_v30 }
 0x794   :  { %2782 = vmatpush1.bf16.msra.mxu0 %v3996_v35 }
 0x795   :  { %2783 = vmatprep.subr.bf16.mxu0 %v4001_v63 }
 0x798   :  { %2784 = vmatpush1.bf16.msra.mxu0 %v3999_v2 }
 0x799   :  { %2785 = vmatprep.subr.bf16.mxu0 %v4004_v36 }
 0x79c   :  { %2786 = vmatpush1.bf16.msra.mxu0 %v4002_v3 }
 0x79d   :  { %2787 = vmatprep.subr.bf16.mxu0 %v4007_v45 }
 0x7a0   :  { %2788 = vmatpush1.bf16.msra.mxu0 %v4005_v16 }
 0x7a1   :  { %2789 = vmatprep.subr.bf16.mxu0 %v4010_v9 }
 0x7a4   :  { %2790 = vmatpush1.bf16.msra.mxu0 %v4008_v58 }
 0x7a5   :  { %2791 = vmatprep.subr.bf16.mxu0 %v4013_v31 }
 0x7a8   :  { %2792 = vmatpush1.bf16.msra.mxu0 %v4011_v38 }
 0x7a9   :  { %2793 = vmatprep.subr.bf16.mxu0 %v4016_v25 }
 0x7ac   :  { %2794 = vmatpush1.bf16.msra.mxu0 %v4014_v11 }
 0x7ad   :  { %2795 = vmatprep.subr.bf16.mxu0 %v4019_v47 }
 0x7b0   :  { %2796 = vmatpush1.bf16.msra.mxu0 %v4017_v17 }
 0x7b1   :  { %2797 = vmatprep.subr.bf16.mxu0 %v4022_v18 }
 0x7b4   :  { %2798 = vmatpush1.bf16.msra.mxu0 %v4020_v24 }
 0x7b5   :  { %2799 = vmatprep.subr.bf16.mxu0 %v4025_v61 }
 0x7b8   :  { %2800 = vmatpush1.bf16.msra.mxu0 %v4023_v19 }
 0x7b9   :  { %2801 = vmatprep.subr.bf16.mxu0 %v4028_v14 }
 0x7bc   :  { %2802 = vmatpush1.bf16.msra.mxu0 %v4026_v49 }
 0x7bd   :  { %2803 = vmatprep.subr.bf16.mxu0 %v4031_v15 }
 0x7c0   :  { %2804 = vmatpush1.bf16.msra.mxu0 %v4029_v57 }
 0x7c1   :  { %2805 = vmatprep.subr.bf16.mxu0 %v4034_v20 }
 0x7c4   :  { %2806 = vmatpush1.bf16.msra.mxu0 %v4032_v21 }
 0x7c5   :  { %2807 = vmatprep.subr.bf16.mxu0 %v4037_v26 }
 0x7c8   :  { %2808 = vmatpush1.bf16.msra.mxu0 %v4035_v8 }
 0x7cb   :  { %2810 = vmatmul.mubr.bf16.vlgmr.msra.gmra.mrb[24].mxu0 %v4819_v52  ;;  %v4042_v52 = vld [vmem:[%s4977_s10 + $0x50] sm:$0xff]  }
 0x7cc   :  { %3665 = vmatprep.subr.bf16.mxu1 %v4042_v52 }
 0x7cd   :  { %3666 = vmatpush3.bf16.msra.mxu1 %v4043_v10 }
 0x7ce   :  { %3667 = vmatprep.subr.bf16.mxu1 %v4044_v1 }
 0x7d1   :  { %3668 = vmatpush3.bf16.msra.mxu1 %v4045_v28 }
 0x7d2   :  { %3669 = vmatprep.subr.bf16.mxu1 %v4046_v29 }
 0x7d5   :  { %3670 = vmatpush3.bf16.msra.mxu1 %v4047_v5 }
 0x7d6   :  { %3671 = vmatprep.subr.bf16.mxu1 %v4048_v39 }
 0x7d9   :  { %3672 = vmatpush3.bf16.msra.mxu1 %v4049_v40 }
 0x7da   :  { %3673 = vmatprep.subr.bf16.mxu1 %v4050_v46 }
 0x7dd   :  { %3674 = vmatpush3.bf16.msra.mxu1 %v4051_v48 }
 0x7de   :  { %3675 = vmatprep.subr.bf16.mxu1 %v4052_v50 }
 0x7e1   :  { %3676 = vmatpush3.bf16.msra.mxu1 %v4053_v51 }
 0x81e   :  { %v4891_v34 = vpop.f32.mrb[16].mxu0  ;;  %v2688_v42 = vpop.f32.mrb[16].mxu1 }
 0x81f   :  { %v2970_v6 = vsel %vm854_vm6, %v4891_v34, 0.0  ;;  %v2860_v55 = vadd.f32 %v2823_v53, %v2688_v42  ;;  %v4895_v43 = vpop.f32.mrb[17].mxu0  ;;  %v2690_v23 = vpop.f32.mrb[17].mxu1  ;;  %v4275_v42 = vmov 1966171168  }
 0x820   :  { %v2971_v56 = vrot.slane %v2970_v6, 4  ;;  %v2977_v0 = vsel %vm854_vm6, %v4895_v43, 0.0  ;;  %v2861_v4 = vadd.f32 %v2827_v54, %v2690_v23  ;;  %v2651_v59 = vpop.f32.mrb[18].mxu0  ;;  %v2692_v60 = vpop.f32.mrb[18].mxu1  ;;  %v3011_v54 = vld [vmem:[%s4975_s8] sm:$0x3] }
 0x821   :  { %v3568_v44 = vmul.f32 -1.442695, %v2860_v55  ;;  %v2978_v32 = vrot.slane %v2977_v0, 4  ;;  %v2652_v37 = vpop.f32.mrb[19].mxu0  ;;  %v2693_v62 = vpop.f32.mrb[19].mxu1  ;;  %v3020_v23 = vrot.slane %v3011_v54, %v4885_v33  ;;  %s4277_s8 = smov [#allocation7]  }
 0x822   :  { %v2972_v35 = vadd.f32 %v2971_v56, %v2970_v6  ;;  %v3569_v63 = vmul.f32 -1.442695, %v2861_v4  ;;  %v3032_v6 = vunpack.c.l.s4 %v4275_v42 }
 0x823   :  { %4126 = vpow2.f32 %v3568_v44  ;;  %v2979_v2 = vadd.f32 %v2978_v32, %v2977_v0 }
 0x824   :  { %v2973_v36 = vrot.slane %v2972_v35, 2  ;;  %4128 = vpow2.f32 %v3569_v63  ;;  %v3033_v0 = vunpack.c.0.s8 %v3032_v6  ;;  %v3025_v63 = vld [vmem:[%s4976_s9] sm:$0x3]  ;;  %s3268_s9 = sshll.u32 %s4277_s8, 4  ;;  %s3269_s9 = int_to_ptr.vmem [resolvable:$true] %s3268_s9 }
 0x825   :  { %v2980_v3 = vrot.slane %v2979_v2, 2  ;;  %s4214_s1 = scalar_lea.vmem %s3269_s9, 256  ;;  %p4219_p3 = scmp.lt.s32.totalorder %s3269_s9, %s3269_s9 }
 0x826   :  { %v2974_v45 = vadd.f32 %v2973_v36, %v2972_v35  ;;  %v3036_v37 = vsub.s32 %v3033_v0, %v4526_v12  ;;  %v2838_v36 = vsub.s32 4, %v4526_v12  ;;  %p4215_p2 = scmp.ne.s32.totalorder %s3269_s9, %s4214_s1  ;;  %p4220_p4 = scmp.lt.s32.totalorder %s4214_s1, %s4214_s1 }
 0x827   :  { %v2981_v16 = vadd.f32 %v2980_v3, %v2979_v2  ;;  %v2830_v2 = vsub.s32 2, %v4526_v12 }
 0x828   :  { %v2975_v9 = vrot.slane %v2974_v45, 1  ;;  %p4221_p5 = por %p4220_p4, %p4219_p3 }
 0x829   :  { %v2982_v58 = vrot.slane %v2981_v16, 1 }
 0x82a   :  { %v2976_v31 = vadd.f32 %v2975_v9, %v2974_v45  ;;  %v2834_v9 = vsub.s32 3, %v4526_v12  ;;  %p4222_p6 = pnand %p4221_p5, %p4215_p2 }
 0x82b   :  { %v2983_v38 = vadd.f32 %v2982_v58, %v2981_v16  ;;  %v2842_v58 = vsub.s32 5, %v4526_v12 }
 0x82c   :  { %v2985_v25 = vmul.f32 0.5, %v2976_v31 }
 0x82d   :  { %v4127_v11 = vpop.eup %4126  ;;  %v2986_v47 = vmul.f32 0.5, %v2983_v38  ;;  %v2831_v38 = vrot.slane %v4882_v41, %v2830_v2 }
 0x82e   :  { %v4129_v17 = vpop.eup %4128  ;;  %v2987_v18 = vsub.f32 %v4891_v34, %v2985_v25  ;;  %v2892_v24 = vadd.f32 1.0, %v4127_v11 }
 0x82f   :  { %v2988_v61 = vsub.f32 %v4895_v43, %v2986_v47  ;;  %v2893_v19 = vadd.f32 1.0, %v4129_v17 }
 0x830   :  { %v2989_v14 = vmul.f32 %v2987_v18, %v2987_v18  ;;  %4130 = vrcp.f32 %v2892_v24  ;;  %v2835_v24 = vrot.slane %v4882_v41, %v2834_v9 }
 0x831   :  { %v2990_v49 = vmul.f32 %v2988_v61, %v2988_v61  ;;  %4132 = vrcp.f32 %v2893_v19  ;;  %v2843_v61 = vrot.slane %v4882_v41, %v2842_v58 }
 0x832   :  { %v2991_v15 = vsel %vm854_vm6, %v2989_v14, 0.0 }
 0x833   :  { %v2992_v57 = vrot.slane %v2991_v15, 4  ;;  %v2998_v20 = vsel %vm854_vm6, %v2990_v49, 0.0 }
 0x834   :  { %v2999_v21 = vrot.slane %v2998_v20, 4 }
 0x835   :  { %v2993_v26 = vadd.f32 %v2992_v57, %v2991_v15 }
 0x836   :  { %v3000_v8 = vadd.f32 %v2999_v21, %v2998_v20 }
 0x837   :  { %v2994_v7 = vrot.slane %v2993_v26, 2 }
 0x838   :  { %v3001_v22 = vrot.slane %v3000_v8, 2 }
 0x839   :  { %v2995_v27 = vadd.f32 %v2994_v7, %v2993_v26 }
 0x83a   :  { %v4131_v30 = vpop.eup %4130  ;;  %v3002_v52 = vadd.f32 %v3001_v22, %v3000_v8 }
 0x83b   :  { %v4133_v10 = vpop.eup %4132  ;;  %v2996_v1 = vrot.slane %v2995_v27, 1  ;;  %v4903_v28 = vmul.f32 %v4131_v30, %v2860_v55  ;;  %v3016_v55 = vrot.slane %v3011_v54, %v4529_v13 }
 0x83c   :  { %v3003_v29 = vrot.slane %v3002_v52, 1  ;;  %v4905_v5 = vmul.f32 %v4133_v10, %v2861_v4 }
 0x83d   :  { %v2997_v39 = vadd.f32 %v2996_v1, %v2995_v27 }
 0x83e   :  { %v3004_v40 = vadd.f32 %v3003_v29, %v3002_v52  ;;  %v2932_v46 = vcombine.low %v4903_v28, %v4905_v5 }
 0x83f   :  { %v3005_v48 = vmul.f32 0.5, %v2997_v39 }
 0x840   :  { %v3006_v50 = vmul.f32 0.5, %v3004_v40 }
 0x841   :  { %v3007_v51 = vadd.f32 1e-05, %v3005_v48 }
 0x842   :  { %v3008_v53 = vadd.f32 1e-05, %v3006_v50 }
 0x843   :  { %4134 = vrsqrt.f32 %v3007_v51 }
 0x844   :  { %4136 = vrsqrt.f32 %v3008_v53 }
 0x84d   :  { %v4135_v56 = vpop.eup %4134 }
 0x84e   :  { %v4137_v4 = vpop.eup %4136  ;;  %v3023_v59 = vmul.f32 %v4135_v56, %v3016_v55  ;;  %v4276_v56 = vmov 1983009808  }
 0x84f   :  { %v3024_v60 = vmul.f32 %v4137_v4, %v3020_v23  ;;  %v2935_v0 = vunpack.c.l.s4 %v4276_v56 }
 0x850   :  { %v3026_v44 = vmul.f32 %v3023_v59, %v2985_v25  ;;  %v3050_v3 = vrot.slane %v3023_v59, %v4529_v13  ;;  %v2839_v25 = vrot.slane %v4882_v41, %v2838_v36 }
 0x851   :  { %v3027_v32 = vmul.f32 %v3024_v60, %v2986_v47  ;;  %v3054_v16 = vrot.slane %v3024_v60, %v4529_v13  ;;  %v2936_v60 = vunpack.c.0.s8 %v2935_v0 }
 0x852   :  { %v3055_v11 = vmul.f32 %v3050_v3, %v4891_v34 }
 0x853   :  { %v3030_v62 = vcombine.low %v3026_v44, %v3027_v32  ;;  %v3056_v47 = vmul.f32 %v3054_v16, %v4895_v43  ;;  %v2939_v16 = vsub.s32 %v2936_v60, %v4526_v12 }
 0x855   :  { %v3037_v35 = vrot.slane %v3030_v62, %v3036_v37 }
 0x857   :  { %v3044_v45 = vrot.slane %v3037_v35, %v3036_v37 }
 0x859   :  { %v3046_v31 = vsub.f32 %v3025_v63, %v3044_v45 }
 0x85b   :  { %v3061_v17 = vrot.slane %v3046_v31, %v4529_v13  ;;  %v3065_v18 = vrot.slane %v3046_v31, %v4885_v33 }
 0x85d   :  { %v3069_v19 = vadd.f32 %v3065_v18, %v3056_v47  ;;  %v3068_v14 = vadd.f32 %v3061_v17, %v3055_v11  ;;  %v2846_v18 = vsub.s32 6, %v4526_v12 }
 0x85e   :  { %v2729_v49 = vpop.f32.mrb[20].mxu0  ;;  %v2770_v15 = vpop.f32.mrb[20].mxu1 }
 0x85f   :  { %v3577_v57 = vmul.f32 -1.442695, %v3069_v19  ;;  %v2862_v20 = vadd.f32 %v2831_v38, %v2729_v49  ;;  %v2864_v21 = vadd.f32 %v2839_v25, %v2770_v15  ;;  %v2731_v26 = vpop.f32.mrb[21].mxu0  ;;  %v2772_v8 = vpop.f32.mrb[21].mxu1  ;;  %v3576_v34 = vmul.f32 -1.442695, %v3068_v14 }
 0x860   :  { %v2863_v7 = vadd.f32 %v2835_v24, %v2731_v26  ;;  %v2865_v43 = vadd.f32 %v2843_v61, %v2772_v8  ;;  %v2733_v22 = vpop.f32.mrb[22].mxu0  ;;  %v2774_v13 = vpop.f32.mrb[22].mxu1  ;;  %v2940_v25 = vrot.slane %v2932_v46, %v2939_v16  ;;  %v2850_v24 = vsub.s32 7, %v4526_v12 }
 0x861   :  { %4138 = vpow2.f32 %v3577_v57  ;;  %v3570_v33 = vmul.f32 -1.442695, %v2862_v20  ;;  %v3572_v27 = vmul.f32 -1.442695, %v2864_v21  ;;  %v2734_v30 = vpop.f32.mrb[23].mxu0  ;;  %v2775_v52 = vpop.f32.mrb[23].mxu1  ;;  %v2847_v61 = vrot.slane %v4882_v41, %v2846_v18 }
 0x862   :  { %v3571_v10 = vmul.f32 -1.442695, %v2863_v7  ;;  %v3573_v1 = vmul.f32 -1.442695, %v2865_v43  ;;  %4140 = vpow2.f32 %v3576_v34 }
 0x863   :  { %4142 = vpow2.f32 %v3570_v33 }
 0x864   :  { %4144 = vpow2.f32 %v3572_v27 }
 0x865   :  { %4146 = vpow2.f32 %v3571_v10 }
 0x866   :  { %4148 = vpow2.f32 %v3573_v1 }
 0x86b   :  { %v4139_v29 = vpop.eup %4138 }
 0x86c   :  { %v4141_v39 = vpop.eup %4140  ;;  %v3077_v40 = vadd.f32 1.0, %v4139_v29 }
 0x86d   :  { %v4143_v48 = vpop.eup %4142  ;;  %v3076_v50 = vadd.f32 1.0, %v4141_v39 }
 0x86e   :  { %v4145_v51 = vpop.eup %4144  ;;  %4150 = vrcp.f32 %v3077_v40  ;;  %v2894_v53 = vadd.f32 1.0, %v4143_v48 }
 0x86f   :  { %v4147_v54 = vpop.eup %4146  ;;  %v2896_v42 = vadd.f32 1.0, %v4145_v51  ;;  %4152 = vrcp.f32 %v3076_v50 }
 0x870   :  { %v4149_v6 = vpop.eup %4148  ;;  %4154 = vrcp.f32 %v2894_v53  ;;  %v2895_v55 = vadd.f32 1.0, %v4147_v54 }
 0x871   :  { %4156 = vrcp.f32 %v2896_v42  ;;  %v2897_v23 = vadd.f32 1.0, %v4149_v6 }
 0x872   :  { %4158 = vrcp.f32 %v2895_v55 }
 0x873   :  { %4160 = vrcp.f32 %v2897_v23 }
 0x878   :  { %v4151_v4 = vpop.eup %4150 }
 0x879   :  { %v4153_v59 = vpop.eup %4152  ;;  %v3083_v44 = vmul.f32 %v4151_v4, %v3069_v19  ;;  %v2851_v19 = vrot.slane %v4882_v41, %v2850_v24 }
 0x87a   :  { %v4155_v32 = vpop.eup %4154  ;;  %v3082_v37 = vmul.f32 %v4153_v59, %v3068_v14 }
 0x87b   :  { %v4157_v62 = vpop.eup %4156  ;;  %v2918_v35 = vmul.f32 %v4155_v32, %v2862_v20  ;;  %v3085_v63 = vpack.c.bf16 %v3083_v44, %v3083_v44 }
 0x87c   :  { %v4159_v2 = vpop.eup %4158  ;;  %v2920_v36 = vmul.f32 %v4157_v62, %v2864_v21  ;;  %v3084_v3 = vpack.c.bf16 %v3082_v37, %v3082_v37 }
 0x87d   :  { %v4161_v45 = vpop.eup %4160  ;;  %v2919_v9 = vmul.f32 %v4159_v2, %v2863_v7  ;;  %3253 = vmatprep.mubr.bf16.mxu1 %v3085_v63 }
 0x87e   :  { %v2921_v58 = vmul.f32 %v4161_v45, %v2865_v43  ;;  %3254 = vmatmul.mubr.bf16.vlgmr.msra.gmra.mrb[24].mxu1 %v3084_v3 }
 0x87f   :  { %v2933_v31 = vcombine.low %v2918_v35, %v2919_v9 }
 0x880   :  { %v2949_v38 = vcombine.low %v2920_v36, %v2921_v58 }
 0x881   :  { %v2947_v11 = vrot.slane %v2933_v31, %v2939_v16 }
 0x882   :  { %v2957_v47 = vrot.slane %v2949_v38, %v2939_v16 }
 0x883   :  { %v2948_v17 = vcombine.low %v2940_v25, %v2947_v11 }
 0x885   :  { %2968 = vst [vmem:[#allocation7] sm:$0xff] %v2948_v17 }
 0x89e   :  { %v2811_v14 = vpop.f32.mrb[24].mxu0 }
 0x89f   :  { %v2866_v49 = vadd.f32 %v2847_v61, %v2811_v14  ;;  %v2813_v15 = vpop.f32.mrb[25].mxu0 }
 0x8a0   :  { %v2867_v57 = vadd.f32 %v2851_v19, %v2813_v15  ;;  %v2815_v20 = vpop.f32.mrb[26].mxu0 }
 0x8a1   :  { %v3574_v21 = vmul.f32 -1.442695, %v2866_v49  ;;  %v2816_v28 = vpop.f32.mrb[27].mxu0 }
 0x8a2   :  { %v3575_v5 = vmul.f32 -1.442695, %v2867_v57 }
 0x8a3   :  { %4162 = vpow2.f32 %v3574_v21 }
 0x8a4   :  { %4164 = vpow2.f32 %v3575_v5 }
 0x8ad   :  { %v4163_v46 = vpop.eup %4162 }
 0x8ae   :  { %v4165_v26 = vpop.eup %4164  ;;  %v2898_v8 = vadd.f32 1.0, %v4163_v46 }
 0x8af   :  { %v2899_v34 = vadd.f32 1.0, %v4165_v26 }
 0x8b0   :  { %4166 = vrcp.f32 %v2898_v8 }
 0x8b1   :  { %4168 = vrcp.f32 %v2899_v34 }
 0x8ba   :  { %v4167_v12 = vpop.eup %4166 }
 0x8bb   :  { %v4169_v7 = vpop.eup %4168  ;;  %v2922_v43 = vmul.f32 %v4167_v12, %v2866_v49 }
 0x8bc   :  { %v2923_v41 = vmul.f32 %v4169_v7, %v2867_v57 }
 0x8be   :  { %v2950_v22 = vcombine.low %v2922_v43, %v2923_v41 }
 0x8c0   :  { %v2964_v13 = vrot.slane %v2950_v22, %v2939_v16 }
 0x8c2   :  { %v2965_v33 = vcombine.low %v2957_v47, %v2964_v13 }
 0x8c4   :  { %2969 = vst [vmem:[#allocation7 + $0x8] sm:$0xff] %v2965_v33 }
 0x8c5   :  { %4225 = shalt.err (!%p4222_p6)
}
 0x8c6   :  { %s4226_s18 = scalar_lea.hbm %s4980_s13, 256 }
 0x8c7   :  { %p4227_p7 = scmp.ne.s32.totalorder %s4980_s13, %s4226_s18  ;;  %p4230_p8 = scmp.lt.u32.totalorder %s4226_s18, %s4980_s13 }
 0x8c9   :  { %p4232_p9 = pnand %p4230_p8, %p4227_p7 }
 0x8cb   :  { %4235 = shalt.err (!%p4232_p9)
}
 0x8cc   :  { %3271 = dma.vmem_to_hbm [thread:$0]  %s3269_s9, 256, %s4980_s13, [#allocation4]   ;;  %v3578_v30 = vld [vmem:[%s4978_s11] ss:$0 sm:$0xff] }
 0x8cd   :  { %s4278_s5 = smov [#allocation8]  }
 0x8ce   :  { %s3278_s6 = sshll.u32 %s4278_s5, 4  ;;  %s3279_s6 = int_to_ptr.vmem [resolvable:$true] %s3278_s6 }
 0x8cf   :  { %s4236_s23 = scalar_lea.vmem %s3279_s6, 32  ;;  %p4241_p11 = scmp.lt.s32.totalorder %s3279_s6, %s3279_s6 }
 0x8d0   :  { %p4237_p10 = scmp.ne.s32.totalorder %s3279_s6, %s4236_s23  ;;  %p4242_p12 = scmp.lt.s32.totalorder %s4236_s23, %s4236_s23 }
 0x8d2   :  { %p4243_p13 = por %p4242_p12, %p4241_p11 }
 0x8d4   :  { %p4244_p0 = pnand %p4243_p13, %p4237_p10 }
 0x951   :  { %v3677_v27 = vpop.f32.mrb[24].mxu1 }
 0x952   :  { %v3678_v52 = vpop.f32.mrb[25].mxu1 }
 0x953   :  { %v3679_v10 = vadd.f32 %v3678_v52, %v3677_v27  ;;  %v3680_v1 = vpop.f32.mrb[26].mxu1 }
 0x954   :  { %v3681_v29 = vpop.f32.mrb[27].mxu1 }
 0x955   :  { %v3256_v39 = vadd.f32 %v3679_v10, %v3578_v30 }
 0x957   :  { %3261 = vst [vmem:[#allocation8] sm:$0x3] %v3256_v39 }
 0x958   :  { %4247 = shalt.err (!%p4244_p0)
}
 0x959   :  { %s4248_s11 = scalar_lea.hbm %s4981_s14, 32 }
 0x95a   :  { %p4249_p1 = scmp.ne.s32.totalorder %s4981_s14, %s4248_s11  ;;  %p4252_p2 = scmp.lt.u32.totalorder %s4248_s11, %s4981_s14 }
 0x95c   :  { %p4254_p3 = pnand %p4252_p2, %p4249_p1 }
 0x95e   :  { %4257 = shalt.err (!%p4254_p3)
}
 0x95f   :  { %3281 = dma.vmem_to_hbm [thread:$0]  %s3279_s6, 32, %s4981_s14, [#allocation9]  }
 0x960   :  { %4262 = dma.done.wait [#allocation4], 256  }
 0x961   :  { %4263 = vsyncadd [#allocation4], 4294967040 }
 0x962   :  { %4264 = dma.done.wait [#allocation9], 32  }
 0x963   :  { %4265 = vsyncadd [#allocation9], 4294967264 }
 0x964   :  { %3288 = vsyncpa [#allocation3], 1 }
 0x965   :  { %3289 = vsyncpa [#allocation6], 1 }
 0x966   :  { %3290 = vsyncpa [#allocation4], 1 }
 0x967   :  { %3291 = vsyncpa [#allocation9], 1 }

</bundles_post_ra>
